<compile_context>
chip_gen: v7x
topology: tpu7x:2x2x1
jax: 0.10.0
libtpu: 0.0.40
codegen_flags: <defaults>
</compile_context>

<pallas_src>
import functools

import jax
import jax.numpy as jnp
from jax.experimental import pallas as pl
from jax.experimental.pallas import tpu as pltpu


def _single_conv_kernel(x_ref, w_ref, shift_ref, mask_ref, o_ref,
                        pad_ref, cols_ref, *, BT, H, W, C_in, C_in_pad, C_out):
    """One grid step = BT images.

    x_ref     : (BT, C_in, H*W)              flattened NCHW input tile
    w_ref     : (C_out, 9*C_in_pad)          conv weight, BN scale folded, K padded
    shift_ref : (C_out, 1)                   folded conv-bias + BN shift (f32)
    mask_ref  : (2, H*W)                     column-edge masks for dx=0 / dx=2 taps
    o_ref     : (BT, C_out, H*W)             flattened NCHW output tile (lane dense)
    pad_ref   : (BT, C_in_pad, H*W + 2W + 2) scratch: row-padded flattened image
    cols_ref  : (9*C_in_pad, BT*H*W)         scratch: im2col, images along lanes
    """
    HW = H * W
    P = W + 1   # zero halo (one pad row + 1 element) on each side of an image

    # ---- build the zero halo + channel padding in VMEM ----------------------
    zeros_guard = jnp.zeros((BT, C_in_pad, P), dtype=pad_ref.dtype)
    pad_ref[:, :, 0:P] = zeros_guard
    pad_ref[:, :, P + HW:2 * P + HW] = zeros_guard
    if C_in_pad > C_in:
        pad_ref[:, C_in:, P:P + HW] = jnp.zeros(
            (BT, C_in_pad - C_in, HW), dtype=pad_ref.dtype)
    pad_ref[:, :C_in, P:P + HW] = x_ref[...]

    mask_l = mask_ref[0:1, :]     # (1, HW): zero where output column x == 0
    mask_r = mask_ref[1:2, :]     # (1, HW): zero where output column x == W-1

    # ---- im2col: every 3x3 tap is a contiguous lane-slice of pad_ref --------
    # cols row = k*C_in_pad + ci ; cols column = b*HW + p   (images along lanes)
    for k in range(9):
        dy, dx = divmod(k, 3)
        off = dy * W + dx
        tap = pad_ref[:, :, off:off + HW]            # (BT, C_in_pad, HW)
        if dx == 0:
            tap = tap * mask_l                       # left-edge reads  -> 0
        elif dx == 2:
            tap = tap * mask_r                       # right-edge reads -> 0
        row0 = k * C_in_pad
        for b in range(BT):                          # aligned (C_in_pad, HW) tiles
            cols_ref[row0:row0 + C_in_pad, b * HW:(b + 1) * HW] = tap[b]

    # ---- one deep-K matmul for the whole batch tile + fused epilogue --------
    acc = jnp.dot(w_ref[...], cols_ref[...],
                  preferred_element_type=jnp.float32)        # (C_out, BT*HW)
    y = jnp.maximum(acc + shift_ref[...], 0.0)               # bias/BN shift + ReLU
    for b in range(BT):
        o_ref[b] = y[:, b * HW:(b + 1) * HW].astype(o_ref.dtype)


def _tpu_kind():
    try:
        dev = jax.devices()[0]
        if dev.platform != "tpu":
            return ""
        return (dev.device_kind or "").lower()
    except Exception:
        return ""


def _gen_config():
    """Returns (default compute dtype, VMEM tile budget, vmem_limit cap, 2-core flag)."""
    kind = _tpu_kind()
    is_v7 = "v7" in kind
    is_v6 = "v6" in kind
    two_cores = is_v7 or ("v4" in kind) or ("v5p" in kind)
    compute_dtype = jnp.bfloat16 if (is_v6 or is_v7) else jnp.float32
    if is_v7:                      # 64 MiB physical VMEM per TensorCore
        budget, vmem_cap = 12 << 20, 30 << 20
    elif is_v6:                    # 128 MiB VMEM
        budget, vmem_cap = 32 << 20, 48 << 20
    else:                          # v5e and older / unknown
        budget, vmem_cap = 24 << 20, 48 << 20
    try:   # refine with the actual VMEM capacity when the query is available
        cap = int(pltpu.get_tpu_info().vmem_capacity_bytes)
        budget = min(budget, cap // 4)
        vmem_cap = min(vmem_cap, cap // 2)
    except Exception:
        pass
    return compute_dtype, budget, vmem_cap, two_cores


def _pick_batch_tile(N, C_in, C_in_pad, C_out, HW, W, K, itemsize,
                     budget_bytes, max_bt):
    """Largest divisor of N (<= max_bt) whose working set fits the VMEM budget."""
    def need(bt):
        in_blk = bt * C_in * HW * itemsize
        out_blk = bt * C_out * HW * 4
        pad = bt * C_in_pad * (HW + 2 * W + 2) * itemsize
        cols = K * bt * HW * itemsize
        consts = (C_out * K + 2 * HW) * itemsize + C_out * 4
        # double-buffered I/O blocks + scratch + constants + temporaries slack
        return 2 * (in_blk + out_blk) + pad + cols + consts + 2 * in_blk

    best = 1
    for cand in range(1, max(1, max_bt) + 1):
        if N % cand == 0 and need(cand) <= budget_bytes:
            best = cand
    return best, need(best)


def single_conv_forward(x_nchw, weight, bias, gamma, beta, run_mean, run_var,
                        eps=1e-5, compute_dtype=None):
    """Forward pass matching PyTorch single_conv (eval-mode BN).

    x_nchw : (N, C_in, H, W) float32
    weight : (C_out, C_in, 3, 3) float32   (PyTorch OIHW)
    compute_dtype: None -> generation default (bf16 on v6e/v7x, f32 otherwise).
    """
    N, C_in, H, W = x_nchw.shape
    C_out = weight.shape[0]
    HW = H * W
    C_in_pad = max(8, -(-C_in // 8) * 8)   # pad input channels to a multiple of 8
    K = 9 * C_in_pad                       # deep-K matmul contraction size

    auto_dtype, budget, vmem_cap, two_cores = _gen_config()
    if compute_dtype is None:
        compute_dtype = auto_dtype

    # ---- fold BN (eval) into the conv weight + a per-channel shift ----------
    inv_std = 1.0 / jnp.sqrt(run_var + eps)
    scale = gamma * inv_std                                       # (C_out,)
    w_scaled = weight * scale[:, None, None, None]                # (C_out,C_in,3,3)
    if C_in_pad > C_in:                                           # zero K columns
        w_scaled = jnp.pad(w_scaled,
                           ((0, 0), (0, C_in_pad - C_in), (0, 0), (0, 0)))
    # OIHW -> (C_out, (dy*3+dx)*C_in_pad + ci)  (matches im2col row order)
    w_mat = jnp.transpose(w_scaled, (0, 2, 3, 1)).reshape(C_out, K)
    w_mat = w_mat.astype(compute_dtype)
    shift = ((bias - run_mean) * scale + beta).reshape(C_out, 1)
    shift = shift.astype(jnp.float32)

    # column-edge masks (output x == 0 for dx=0 taps, x == W-1 for dx=2 taps)
    xi = jnp.arange(HW, dtype=jnp.int32) % W
    mask = jnp.stack([(xi != 0), (xi != W - 1)]).astype(compute_dtype)  # (2, HW)

    # NCHW kept end-to-end: only free reshapes, no pad / transpose HBM passes.
    x_flat = x_nchw.reshape(N, C_in, HW).astype(compute_dtype)

    itemsize = jnp.dtype(compute_dtype).itemsize
    max_bt = min(N, 16)
    if two_cores and N >= 2:
        max_bt = min(max_bt, N // 2)       # >= 2 parallel grid steps for 2 cores
    BT, need = _pick_batch_tile(N, C_in, C_in_pad, C_out, HW, W, K, itemsize,
                                budget, max_bt)
    vmem_limit = int(min(vmem_cap, max(16 << 20, 2 * need)))

    kernel = functools.partial(_single_conv_kernel, BT=BT, H=H, W=W,
                               C_in=C_in, C_in_pad=C_in_pad, C_out=C_out)

    def build(single_buffer_consts):
        ck = {"pipeline_mode": pl.Buffered(1)} if single_buffer_consts else {}
        return pl.pallas_call(
            kernel,
            out_shape=jax.ShapeDtypeStruct((N, C_out, HW), jnp.float32),
            grid_spec=pltpu.PrefetchScalarGridSpec(
                num_scalar_prefetch=0,
                grid=(N // BT,),
                in_specs=[
                    pl.BlockSpec((BT, C_in, HW), lambda n: (n, 0, 0)),
                    pl.BlockSpec((C_out, K), lambda n: (0, 0), **ck),
                    pl.BlockSpec((C_out, 1), lambda n: (0, 0), **ck),
                    pl.BlockSpec((2, HW), lambda n: (0, 0), **ck),
                ],
                out_specs=pl.BlockSpec((BT, C_out, HW), lambda n: (n, 0, 0)),
                scratch_shapes=[
                    pltpu.VMEM((BT, C_in_pad, HW + 2 * W + 2), compute_dtype),
                    pltpu.VMEM((K, BT * HW), compute_dtype),
                ],
            ),
            compiler_params=pltpu.CompilerParams(
                dimension_semantics=("parallel",),
                vmem_limit_bytes=vmem_limit),
        )

    args = (x_flat, w_mat, shift, mask)
    try:
        out = build(True)(*args)
    except Exception:
        # pipeline_mode=pl.Buffered(1) not supported on this jax version.
        out = build(False)(*args)

    return out.reshape(N, C_out, H, W)


def _reference(x_nchw, weight, bias, gamma, beta, run_mean, run_var, eps=1e-5):
    """Pure-JAX reference (lax conv) for verification."""
    y = jax.lax.conv_general_dilated(
        x_nchw, weight, window_strides=(1, 1), padding=((1, 1), (1, 1)),
        dimension_numbers=("NCHW", "OIHW", "NCHW"))
    y = y + bias[None, :, None, None]
    y = (y - run_mean[None, :, None, None]) / jnp.sqrt(
        run_var[None, :, None, None] + eps)
    y = y * gamma[None, :, None, None] + beta[None, :, None, None]
    return jnp.maximum(y, 0.0)


if __name__ == "__main__":
    key = jax.random.PRNGKey(0)
    k_x, k_w, k_b, k_g, k_be, k_m, k_v = jax.random.split(key, 7)

    N, C_in, C_out, H, W = 2, 4, 8, 16, 16

    x = jax.random.normal(k_x, (N, C_in, H, W), dtype=jnp.float32)
    weight = jax.random.normal(k_w, (C_out, C_in, 3, 3), dtype=jnp.float32) * 0.1
    bias = jax.random.normal(k_b, (C_out,), dtype=jnp.float32) * 0.1
    gamma = 1.0 + 0.1 * jax.random.normal(k_g, (C_out,), dtype=jnp.float32)
    beta = 0.1 * jax.random.normal(k_be, (C_out,), dtype=jnp.float32)
    run_mean = 0.1 * jax.random.normal(k_m, (C_out,), dtype=jnp.float32)
    run_var = jnp.abs(jax.random.normal(k_v, (C_out,), dtype=jnp.float32)) + 0.5

    ref = _reference(x, weight, bias, gamma, beta, run_mean, run_var)

    # Bit-faithful-ish check in f32.
    out = single_conv_forward(x, weight, bias, gamma, beta, run_mean, run_var,
                              compute_dtype=jnp.float32)
    out = jax.block_until_ready(out)
    assert out.shape == (N, C_out, H, W)
    assert jnp.allclose(out, ref, atol=2e-4, rtol=2e-4), "f32 mismatch vs reference"

    # Generation-default dtype path (bf16 on v6e/v7x, f32 elsewhere).
    auto_dtype, _, _, _ = _gen_config()
    out_auto = single_conv_forward(x, weight, bias, gamma, beta, run_mean, run_var)
    out_auto = jax.block_until_ready(out_auto)
    if jnp.dtype(auto_dtype) == jnp.dtype(jnp.float32):
        tol = 2e-4
    else:
        tol = 6e-2
    assert jnp.allclose(out_auto, ref, atol=tol, rtol=tol), \
        "auto-dtype mismatch vs reference"

    print("KERNEL_OK")
</pallas_src>

<mosaic_0001>
module attributes {stable_mosaic.version = 11 : i64} {
  func.func @_single_conv_kernel(%arg0: i32, %arg1: memref<2x4x256xf32, #tpu.memory_space<vmem>>, %arg2: memref<8x72xf32, #tpu.memory_space<vmem>>, %arg3: memref<8x1xf32, #tpu.memory_space<vmem>>, %arg4: memref<2x256xf32, #tpu.memory_space<vmem>>, %arg5: memref<2x8x256xf32, #tpu.memory_space<vmem>>, %arg6: memref<2x8x290xf32, #tpu.memory_space<vmem>>, %arg7: memref<72x512xf32, #tpu.memory_space<vmem>>) attributes {dimension_semantics = [#tpu.dimension_semantics<parallel>], iteration_bounds = array<i64: 1>, scalar_prefetch = 0 : i64, scratch_operands = 2 : i64, tpu.core_type = #tpu.core_type<tc>, window_params = [{transform_indices = @transform_0, window_bounds = array<i64: 2, 4, 256>}, {pipeline_mode = #tpu.pipeline_mode<synchronous>, transform_indices = @transform_1, window_bounds = array<i64: 8, 72>}, {pipeline_mode = #tpu.pipeline_mode<synchronous>, transform_indices = @transform_2, window_bounds = array<i64: 8, 1>}, {pipeline_mode = #tpu.pipeline_mode<synchronous>, transform_indices = @transform_3, window_bounds = array<i64: 2, 256>}, {transform_indices = @transform_4, window_bounds = array<i64: 2, 8, 256>}]} {
    %cst = arith.constant 0.000000e+00 : f32
    %0 = vector.broadcast %cst : f32 to vector<2x8x17xf32>
    %c0 = arith.constant 0 : index
    %c0_0 = arith.constant 0 : index
    %c0_1 = arith.constant 0 : index
    %1 = vector.load %arg6[%c0, %c0_0, %c0_1] : memref<2x8x290xf32, #tpu.memory_space<vmem>>, vector<2x8x17xf32>
    tpu.vector_store %arg6[%c0, %c0_0, %c0_1], %0 {strides = array<i32>} : memref<2x8x290xf32, #tpu.memory_space<vmem>>, vector<2x8x17xf32>,
    %c0_2 = arith.constant 0 : index
    %c0_3 = arith.constant 0 : index
    %c273 = arith.constant 273 : index
    %2 = vector.load %arg6[%c0_2, %c0_3, %c273] : memref<2x8x290xf32, #tpu.memory_space<vmem>>, vector<2x8x17xf32>
    tpu.vector_store %arg6[%c0_2, %c0_3, %c273], %0 {strides = array<i32>} : memref<2x8x290xf32, #tpu.memory_space<vmem>>, vector<2x8x17xf32>,
    %cst_4 = arith.constant 0.000000e+00 : f32
    %3 = vector.broadcast %cst_4 : f32 to vector<2x4x256xf32>
    %c0_5 = arith.constant 0 : index
    %c4 = arith.constant 4 : index
    %c17 = arith.constant 17 : index
    %4 = vector.load %arg6[%c0_5, %c4, %c17] : memref<2x8x290xf32, #tpu.memory_space<vmem>>, vector<2x4x256xf32>
    tpu.vector_store %arg6[%c0_5, %c4, %c17], %3 {strides = array<i32>} : memref<2x8x290xf32, #tpu.memory_space<vmem>>, vector<2x4x256xf32>,
    %c0_6 = arith.constant 0 : index
    %c0_7 = arith.constant 0 : index
    %c0_8 = arith.constant 0 : index
    %5 = vector.load %arg1[%c0_6, %c0_7, %c0_8] : memref<2x4x256xf32, #tpu.memory_space<vmem>>, vector<2x4x256xf32>
    %c0_9 = arith.constant 0 : index
    %c0_10 = arith.constant 0 : index
    %c17_11 = arith.constant 17 : index
    %6 = vector.load %arg6[%c0_9, %c0_10, %c17_11] : memref<2x8x290xf32, #tpu.memory_space<vmem>>, vector<2x4x256xf32>
    tpu.vector_store %arg6[%c0_9, %c0_10, %c17_11], %5 {strides = array<i32>} : memref<2x8x290xf32, #tpu.memory_space<vmem>>, vector<2x4x256xf32>,
    %c0_12 = arith.constant 0 : index
    %c0_13 = arith.constant 0 : index
    %7 = vector.load %arg4[%c0_12, %c0_13] : memref<2x256xf32, #tpu.memory_space<vmem>>, vector<1x256xf32>
    %c1 = arith.constant 1 : index
    %c0_14 = arith.constant 0 : index
    %8 = vector.load %arg4[%c1, %c0_14] : memref<2x256xf32, #tpu.memory_space<vmem>>, vector<1x256xf32>
    %c0_15 = arith.constant 0 : index
    %c0_16 = arith.constant 0 : index
    %c0_17 = arith.constant 0 : index
    %9 = vector.load %arg6[%c0_15, %c0_16, %c0_17] : memref<2x8x290xf32, #tpu.memory_space<vmem>>, vector<2x8x256xf32>
    %10 = vector.shape_cast %7 : vector<1x256xf32> to vector<1x1x256xf32>
    %11 = vector.broadcast %10 : vector<1x1x256xf32> to vector<2x8x256xf32>
    %12 = arith.mulf %9, %11 : vector<2x8x256xf32>
    %13 = vector.extract_strided_slice %12 {offsets = [0, 0, 0], sizes = [1, 8, 256], strides = [1, 1, 1]} : vector<2x8x256xf32> to vector<1x8x256xf32>
    %14 = vector.shape_cast %13 : vector<1x8x256xf32> to vector<8x256xf32>
    %c0_18 = arith.constant 0 : index
    %c0_19 = arith.constant 0 : index
    %15 = vector.load %arg7[%c0_18, %c0_19] : memref<72x512xf32, #tpu.memory_space<vmem>>, vector<8x256xf32>
    tpu.vector_store %arg7[%c0_18, %c0_19], %14 {strides = array<i32>} : memref<72x512xf32, #tpu.memory_space<vmem>>, vector<8x256xf32>,
    %16 = vector.extract_strided_slice %12 {offsets = [1, 0, 0], sizes = [1, 8, 256], strides = [1, 1, 1]} : vector<2x8x256xf32> to vector<1x8x256xf32>
    %17 = vector.shape_cast %16 : vector<1x8x256xf32> to vector<8x256xf32>
    %c0_20 = arith.constant 0 : index
    %c256 = arith.constant 256 : index
    %18 = vector.load %arg7[%c0_20, %c256] : memref<72x512xf32, #tpu.memory_space<vmem>>, vector<8x256xf32>
    tpu.vector_store %arg7[%c0_20, %c256], %17 {strides = array<i32>} : memref<72x512xf32, #tpu.memory_space<vmem>>, vector<8x256xf32>,
    %c0_21 = arith.constant 0 : index
    %c0_22 = arith.constant 0 : index
    %c1_23 = arith.constant 1 : index
    %19 = vector.load %arg6[%c0_21, %c0_22, %c1_23] : memref<2x8x290xf32, #tpu.memory_space<vmem>>, vector<2x8x256xf32>
    %20 = vector.extract_strided_slice %19 {offsets = [0, 0, 0], sizes = [1, 8, 256], strides = [1, 1, 1]} : vector<2x8x256xf32> to vector<1x8x256xf32>
    %21 = vector.shape_cast %20 : vector<1x8x256xf32> to vector<8x256xf32>
    %c8 = arith.constant 8 : index
    %c0_24 = arith.constant 0 : index
    %22 = vector.load %arg7[%c8, %c0_24] : memref<72x512xf32, #tpu.memory_space<vmem>>, vector<8x256xf32>
    tpu.vector_store %arg7[%c8, %c0_24], %21 {strides = array<i32>} : memref<72x512xf32, #tpu.memory_space<vmem>>, vector<8x256xf32>,
    %23 = vector.extract_strided_slice %19 {offsets = [1, 0, 0], sizes = [1, 8, 256], strides = [1, 1, 1]} : vector<2x8x256xf32> to vector<1x8x256xf32>
    %24 = vector.shape_cast %23 : vector<1x8x256xf32> to vector<8x256xf32>
    %c8_25 = arith.constant 8 : index
    %c256_26 = arith.constant 256 : index
    %25 = vector.load %arg7[%c8_25, %c256_26] : memref<72x512xf32, #tpu.memory_space<vmem>>, vector<8x256xf32>
    tpu.vector_store %arg7[%c8_25, %c256_26], %24 {strides = array<i32>} : memref<72x512xf32, #tpu.memory_space<vmem>>, vector<8x256xf32>,
    %c0_27 = arith.constant 0 : index
    %c0_28 = arith.constant 0 : index
    %c2 = arith.constant 2 : index
    %26 = vector.load %arg6[%c0_27, %c0_28, %c2] : memref<2x8x290xf32, #tpu.memory_space<vmem>>, vector<2x8x256xf32>
    %27 = vector.shape_cast %8 : vector<1x256xf32> to vector<1x1x256xf32>
    %28 = vector.broadcast %27 : vector<1x1x256xf32> to vector<2x8x256xf32>
    %29 = arith.mulf %26, %28 : vector<2x8x256xf32>
    %30 = vector.extract_strided_slice %29 {offsets = [0, 0, 0], sizes = [1, 8, 256], strides = [1, 1, 1]} : vector<2x8x256xf32> to vector<1x8x256xf32>
    %31 = vector.shape_cast %30 : vector<1x8x256xf32> to vector<8x256xf32>
    %c16 = arith.constant 16 : index
    %c0_29 = arith.constant 0 : index
    %32 = vector.load %arg7[%c16, %c0_29] : memref<72x512xf32, #tpu.memory_space<vmem>>, vector<8x256xf32>
    tpu.vector_store %arg7[%c16, %c0_29], %31 {strides = array<i32>} : memref<72x512xf32, #tpu.memory_space<vmem>>, vector<8x256xf32>,
    %33 = vector.extract_strided_slice %29 {offsets = [1, 0, 0], sizes = [1, 8, 256], strides = [1, 1, 1]} : vector<2x8x256xf32> to vector<1x8x256xf32>
    %34 = vector.shape_cast %33 : vector<1x8x256xf32> to vector<8x256xf32>
    %c16_30 = arith.constant 16 : index
    %c256_31 = arith.constant 256 : index
    %35 = vector.load %arg7[%c16_30, %c256_31] : memref<72x512xf32, #tpu.memory_space<vmem>>, vector<8x256xf32>
    tpu.vector_store %arg7[%c16_30, %c256_31], %34 {strides = array<i32>} : memref<72x512xf32, #tpu.memory_space<vmem>>, vector<8x256xf32>,
    %c0_32 = arith.constant 0 : index
    %c0_33 = arith.constant 0 : index
    %c16_34 = arith.constant 16 : index
    %36 = vector.load %arg6[%c0_32, %c0_33, %c16_34] : memref<2x8x290xf32, #tpu.memory_space<vmem>>, vector<2x8x256xf32>
    %37 = vector.shape_cast %7 : vector<1x256xf32> to vector<1x1x256xf32>
    %38 = vector.broadcast %37 : vector<1x1x256xf32> to vector<2x8x256xf32>
    %39 = arith.mulf %36, %38 : vector<2x8x256xf32>
    %40 = vector.extract_strided_slice %39 {offsets = [0, 0, 0], sizes = [1, 8, 256], strides = [1, 1, 1]} : vector<2x8x256xf32> to vector<1x8x256xf32>
    %41 = vector.shape_cast %40 : vector<1x8x256xf32> to vector<8x256xf32>
    %c24 = arith.constant 24 : index
    %c0_35 = arith.constant 0 : index
    %42 = vector.load %arg7[%c24, %c0_35] : memref<72x512xf32, #tpu.memory_space<vmem>>, vector<8x256xf32>
    tpu.vector_store %arg7[%c24, %c0_35], %41 {strides = array<i32>} : memref<72x512xf32, #tpu.memory_space<vmem>>, vector<8x256xf32>,
    %43 = vector.extract_strided_slice %39 {offsets = [1, 0, 0], sizes = [1, 8, 256], strides = [1, 1, 1]} : vector<2x8x256xf32> to vector<1x8x256xf32>
    %44 = vector.shape_cast %43 : vector<1x8x256xf32> to vector<8x256xf32>
    %c24_36 = arith.constant 24 : index
    %c256_37 = arith.constant 256 : index
    %45 = vector.load %arg7[%c24_36, %c256_37] : memref<72x512xf32, #tpu.memory_space<vmem>>, vector<8x256xf32>
    tpu.vector_store %arg7[%c24_36, %c256_37], %44 {strides = array<i32>} : memref<72x512xf32, #tpu.memory_space<vmem>>, vector<8x256xf32>,
    %c0_38 = arith.constant 0 : index
    %c0_39 = arith.constant 0 : index
    %c17_40 = arith.constant 17 : index
    %46 = vector.load %arg6[%c0_38, %c0_39, %c17_40] : memref<2x8x290xf32, #tpu.memory_space<vmem>>, vector<2x8x256xf32>
    %47 = vector.extract_strided_slice %46 {offsets = [0, 0, 0], sizes = [1, 8, 256], strides = [1, 1, 1]} : vector<2x8x256xf32> to vector<1x8x256xf32>
    %48 = vector.shape_cast %47 : vector<1x8x256xf32> to vector<8x256xf32>
    %c32 = arith.constant 32 : index
    %c0_41 = arith.constant 0 : index
    %49 = vector.load %arg7[%c32, %c0_41] : memref<72x512xf32, #tpu.memory_space<vmem>>, vector<8x256xf32>
    tpu.vector_store %arg7[%c32, %c0_41], %48 {strides = array<i32>} : memref<72x512xf32, #tpu.memory_space<vmem>>, vector<8x256xf32>,
    %50 = vector.extract_strided_slice %46 {offsets = [1, 0, 0], sizes = [1, 8, 256], strides = [1, 1, 1]} : vector<2x8x256xf32> to vector<1x8x256xf32>
    %51 = vector.shape_cast %50 : vector<1x8x256xf32> to vector<8x256xf32>
    %c32_42 = arith.constant 32 : index
    %c256_43 = arith.constant 256 : index
    %52 = vector.load %arg7[%c32_42, %c256_43] : memref<72x512xf32, #tpu.memory_space<vmem>>, vector<8x256xf32>
    tpu.vector_store %arg7[%c32_42, %c256_43], %51 {strides = array<i32>} : memref<72x512xf32, #tpu.memory_space<vmem>>, vector<8x256xf32>,
    %c0_44 = arith.constant 0 : index
    %c0_45 = arith.constant 0 : index
    %c18 = arith.constant 18 : index
    %53 = vector.load %arg6[%c0_44, %c0_45, %c18] : memref<2x8x290xf32, #tpu.memory_space<vmem>>, vector<2x8x256xf32>
    %54 = vector.shape_cast %8 : vector<1x256xf32> to vector<1x1x256xf32>
    %55 = vector.broadcast %54 : vector<1x1x256xf32> to vector<2x8x256xf32>
    %56 = arith.mulf %53, %55 : vector<2x8x256xf32>
    %57 = vector.extract_strided_slice %56 {offsets = [0, 0, 0], sizes = [1, 8, 256], strides = [1, 1, 1]} : vector<2x8x256xf32> to vector<1x8x256xf32>
    %58 = vector.shape_cast %57 : vector<1x8x256xf32> to vector<8x256xf32>
    %c40 = arith.constant 40 : index
    %c0_46 = arith.constant 0 : index
    %59 = vector.load %arg7[%c40, %c0_46] : memref<72x512xf32, #tpu.memory_space<vmem>>, vector<8x256xf32>
    tpu.vector_store %arg7[%c40, %c0_46], %58 {strides = array<i32>} : memref<72x512xf32, #tpu.memory_space<vmem>>, vector<8x256xf32>,
    %60 = vector.extract_strided_slice %56 {offsets = [1, 0, 0], sizes = [1, 8, 256], strides = [1, 1, 1]} : vector<2x8x256xf32> to vector<1x8x256xf32>
    %61 = vector.shape_cast %60 : vector<1x8x256xf32> to vector<8x256xf32>
    %c40_47 = arith.constant 40 : index
    %c256_48 = arith.constant 256 : index
    %62 = vector.load %arg7[%c40_47, %c256_48] : memref<72x512xf32, #tpu.memory_space<vmem>>, vector<8x256xf32>
    tpu.vector_store %arg7[%c40_47, %c256_48], %61 {strides = array<i32>} : memref<72x512xf32, #tpu.memory_space<vmem>>, vector<8x256xf32>,
    %c0_49 = arith.constant 0 : index
    %c0_50 = arith.constant 0 : index
    %c32_51 = arith.constant 32 : index
    %63 = vector.load %arg6[%c0_49, %c0_50, %c32_51] : memref<2x8x290xf32, #tpu.memory_space<vmem>>, vector<2x8x256xf32>
    %64 = vector.shape_cast %7 : vector<1x256xf32> to vector<1x1x256xf32>
    %65 = vector.broadcast %64 : vector<1x1x256xf32> to vector<2x8x256xf32>
    %66 = arith.mulf %63, %65 : vector<2x8x256xf32>
    %67 = vector.extract_strided_slice %66 {offsets = [0, 0, 0], sizes = [1, 8, 256], strides = [1, 1, 1]} : vector<2x8x256xf32> to vector<1x8x256xf32>
    %68 = vector.shape_cast %67 : vector<1x8x256xf32> to vector<8x256xf32>
    %c48 = arith.constant 48 : index
    %c0_52 = arith.constant 0 : index
    %69 = vector.load %arg7[%c48, %c0_52] : memref<72x512xf32, #tpu.memory_space<vmem>>, vector<8x256xf32>
    tpu.vector_store %arg7[%c48, %c0_52], %68 {strides = array<i32>} : memref<72x512xf32, #tpu.memory_space<vmem>>, vector<8x256xf32>,
    %70 = vector.extract_strided_slice %66 {offsets = [1, 0, 0], sizes = [1, 8, 256], strides = [1, 1, 1]} : vector<2x8x256xf32> to vector<1x8x256xf32>
    %71 = vector.shape_cast %70 : vector<1x8x256xf32> to vector<8x256xf32>
    %c48_53 = arith.constant 48 : index
    %c256_54 = arith.constant 256 : index
    %72 = vector.load %arg7[%c48_53, %c256_54] : memref<72x512xf32, #tpu.memory_space<vmem>>, vector<8x256xf32>
    tpu.vector_store %arg7[%c48_53, %c256_54], %71 {strides = array<i32>} : memref<72x512xf32, #tpu.memory_space<vmem>>, vector<8x256xf32>,
    %c0_55 = arith.constant 0 : index
    %c0_56 = arith.constant 0 : index
    %c33 = arith.constant 33 : index
    %73 = vector.load %arg6[%c0_55, %c0_56, %c33] : memref<2x8x290xf32, #tpu.memory_space<vmem>>, vector<2x8x256xf32>
    %74 = vector.extract_strided_slice %73 {offsets = [0, 0, 0], sizes = [1, 8, 256], strides = [1, 1, 1]} : vector<2x8x256xf32> to vector<1x8x256xf32>
    %75 = vector.shape_cast %74 : vector<1x8x256xf32> to vector<8x256xf32>
    %c56 = arith.constant 56 : index
    %c0_57 = arith.constant 0 : index
    %76 = vector.load %arg7[%c56, %c0_57] : memref<72x512xf32, #tpu.memory_space<vmem>>, vector<8x256xf32>
    tpu.vector_store %arg7[%c56, %c0_57], %75 {strides = array<i32>} : memref<72x512xf32, #tpu.memory_space<vmem>>, vector<8x256xf32>,
    %77 = vector.extract_strided_slice %73 {offsets = [1, 0, 0], sizes = [1, 8, 256], strides = [1, 1, 1]} : vector<2x8x256xf32> to vector<1x8x256xf32>
    %78 = vector.shape_cast %77 : vector<1x8x256xf32> to vector<8x256xf32>
    %c56_58 = arith.constant 56 : index
    %c256_59 = arith.constant 256 : index
    %79 = vector.load %arg7[%c56_58, %c256_59] : memref<72x512xf32, #tpu.memory_space<vmem>>, vector<8x256xf32>
    tpu.vector_store %arg7[%c56_58, %c256_59], %78 {strides = array<i32>} : memref<72x512xf32, #tpu.memory_space<vmem>>, vector<8x256xf32>,
    %c0_60 = arith.constant 0 : index
    %c0_61 = arith.constant 0 : index
    %c34 = arith.constant 34 : index
    %80 = vector.load %arg6[%c0_60, %c0_61, %c34] : memref<2x8x290xf32, #tpu.memory_space<vmem>>, vector<2x8x256xf32>
    %81 = vector.shape_cast %8 : vector<1x256xf32> to vector<1x1x256xf32>
    %82 = vector.broadcast %81 : vector<1x1x256xf32> to vector<2x8x256xf32>
    %83 = arith.mulf %80, %82 : vector<2x8x256xf32>
    %84 = vector.extract_strided_slice %83 {offsets = [0, 0, 0], sizes = [1, 8, 256], strides = [1, 1, 1]} : vector<2x8x256xf32> to vector<1x8x256xf32>
    %85 = vector.shape_cast %84 : vector<1x8x256xf32> to vector<8x256xf32>
    %c64 = arith.constant 64 : index
    %c0_62 = arith.constant 0 : index
    %86 = vector.load %arg7[%c64, %c0_62] : memref<72x512xf32, #tpu.memory_space<vmem>>, vector<8x256xf32>
    tpu.vector_store %arg7[%c64, %c0_62], %85 {strides = array<i32>} : memref<72x512xf32, #tpu.memory_space<vmem>>, vector<8x256xf32>,
    %87 = vector.extract_strided_slice %83 {offsets = [1, 0, 0], sizes = [1, 8, 256], strides = [1, 1, 1]} : vector<2x8x256xf32> to vector<1x8x256xf32>
    %88 = vector.shape_cast %87 : vector<1x8x256xf32> to vector<8x256xf32>
    %c64_63 = arith.constant 64 : index
    %c256_64 = arith.constant 256 : index
    %89 = vector.load %arg7[%c64_63, %c256_64] : memref<72x512xf32, #tpu.memory_space<vmem>>, vector<8x256xf32>
    tpu.vector_store %arg7[%c64_63, %c256_64], %88 {strides = array<i32>} : memref<72x512xf32, #tpu.memory_space<vmem>>, vector<8x256xf32>,
    %c0_65 = arith.constant 0 : index
    %c0_66 = arith.constant 0 : index
    %90 = vector.load %arg2[%c0_65, %c0_66] : memref<8x72xf32, #tpu.memory_space<vmem>>, vector<8x72xf32>
    %c0_67 = arith.constant 0 : index
    %c0_68 = arith.constant 0 : index
    %91 = vector.load %arg7[%c0_67, %c0_68] : memref<72x512xf32, #tpu.memory_space<vmem>>, vector<72x512xf32>
    %cst_69 = arith.constant dense<0.000000e+00> : vector<8x512xf32>
    %92 = tpu.matmul %90, %91, %cst_69 {dimension_numbers = #tpu.dot_dimension_numbers<[1], [0], [0], [1], [0, 0, 1, 1], [], []>} : vector<8x72xf32>, vector<72x512xf32>, vector<8x512xf32> -> vector<8x512xf32>
    %c0_70 = arith.constant 0 : index
    %c0_71 = arith.constant 0 : index
    %93 = vector.load %arg3[%c0_70, %c0_71] : memref<8x1xf32, #tpu.memory_space<vmem>>, vector<8x1xf32>
    %94 = vector.broadcast %93 : vector<8x1xf32> to vector<8x512xf32>
    %95 = arith.addf %92, %94 : vector<8x512xf32>
    %cst_72 = arith.constant 0.000000e+00 : f32
    %96 = vector.broadcast %cst_72 : f32 to vector<8x512xf32>
    %97 = arith.maximumf %95, %96 : vector<8x512xf32>
    %98 = vector.extract_strided_slice %97 {offsets = [0, 0], sizes = [8, 256], strides = [1, 1]} : vector<8x512xf32> to vector<8x256xf32>
    %c0_73 = arith.constant 0 : index
    %c0_74 = arith.constant 0 : index
    %c0_75 = arith.constant 0 : index
    %99 = vector.load %arg5[%c0_73, %c0_74, %c0_75] : memref<2x8x256xf32, #tpu.memory_space<vmem>>, vector<1x8x256xf32>
    %100 = vector.shape_cast %99 : vector<1x8x256xf32> to vector<8x256xf32>
    %101 = vector.shape_cast %98 : vector<8x256xf32> to vector<1x8x256xf32>
    tpu.vector_store %arg5[%c0_73, %c0_74, %c0_75], %101 {strides = array<i32>} : memref<2x8x256xf32, #tpu.memory_space<vmem>>, vector<1x8x256xf32>,
    %102 = vector.extract_strided_slice %97 {offsets = [0, 256], sizes = [8, 256], strides = [1, 1]} : vector<8x512xf32> to vector<8x256xf32>
    %c1_76 = arith.constant 1 : index
    %c0_77 = arith.constant 0 : index
    %c0_78 = arith.constant 0 : index
    %103 = vector.load %arg5[%c1_76, %c0_77, %c0_78] : memref<2x8x256xf32, #tpu.memory_space<vmem>>, vector<1x8x256xf32>
    %104 = vector.shape_cast %103 : vector<1x8x256xf32> to vector<8x256xf32>
    %105 = vector.shape_cast %102 : vector<8x256xf32> to vector<1x8x256xf32>
    tpu.vector_store %arg5[%c1_76, %c0_77, %c0_78], %105 {strides = array<i32>} : memref<2x8x256xf32, #tpu.memory_space<vmem>>, vector<1x8x256xf32>,
    return
  }
  func.func @transform_0(%arg0: i32) -> (i32, i32, i32) {
    %c0_i32 = arith.constant 0 : i32
    %c0_i32_0 = arith.constant 0 : i32
    %c0_i32_1 = arith.constant 0 : i32
    return %arg0, %c0_i32, %c0_i32_0 : i32, i32, i32
  }
  func.func @transform_1(%arg0: i32) -> (i32, i32) {
    %c0_i32 = arith.constant 0 : i32
    %c0_i32_0 = arith.constant 0 : i32
    %c0_i32_1 = arith.constant 0 : i32
    return %c0_i32, %c0_i32_0 : i32, i32
  }
  func.func @transform_2(%arg0: i32) -> (i32, i32) {
    %c0_i32 = arith.constant 0 : i32
    %c0_i32_0 = arith.constant 0 : i32
    %c0_i32_1 = arith.constant 0 : i32
    return %c0_i32, %c0_i32_0 : i32, i32
  }
  func.func @transform_3(%arg0: i32) -> (i32, i32) {
    %c0_i32 = arith.constant 0 : i32
    %c0_i32_0 = arith.constant 0 : i32
    %c0_i32_1 = arith.constant 0 : i32
    return %c0_i32, %c0_i32_0 : i32, i32
  }
  func.func @transform_4(%arg0: i32) -> (i32, i32, i32) {
    %c0_i32 = arith.constant 0 : i32
    %c0_i32_0 = arith.constant 0 : i32
    %c0_i32_1 = arith.constant 0 : i32
    return %arg0, %c0_i32, %c0_i32_0 : i32, i32, i32
  }
}

module attributes {stable_mosaic.version = 11 : i64} {
  func.func @_single_conv_kernel(%arg0: i32, %arg1: memref<2x4x256xf32, #tpu.memory_space<vmem>>, %arg2: memref<8x72xf32, #tpu.memory_space<vmem>>, %arg3: memref<8x1xf32, #tpu.memory_space<vmem>>, %arg4: memref<2x256xf32, #tpu.memory_space<vmem>>, %arg5: memref<2x8x256xf32, #tpu.memory_space<vmem>>, %arg6: memref<2x8x290xf32, #tpu.memory_space<vmem>>, %arg7: memref<72x512xf32, #tpu.memory_space<vmem>>) attributes {dimension_semantics = [#tpu.dimension_semantics<parallel>], iteration_bounds = array<i64: 1>, scalar_prefetch = 0 : i64, scratch_operands = 2 : i64, tpu.core_type = #tpu.core_type<tc>, window_params = [{transform_indices = @transform_0, window_bounds = array<i64: 2, 4, 256>}, {pipeline_mode = #tpu.pipeline_mode<synchronous>, transform_indices = @transform_1, window_bounds = array<i64: 8, 72>}, {pipeline_mode = #tpu.pipeline_mode<synchronous>, transform_indices = @transform_2, window_bounds = array<i64: 8, 1>}, {pipeline_mode = #tpu.pipeline_mode<synchronous>, transform_indices = @transform_3, window_bounds = array<i64: 2, 256>}, {transform_indices = @transform_4, window_bounds = array<i64: 2, 8, 256>}]} {
    %cst = arith.constant 0.000000e+00 : f32
    %0 = vector.broadcast %cst : f32 to vector<2x8x17xf32>
    %c0 = arith.constant 0 : index
    %c0_0 = arith.constant 0 : index
    %c0_1 = arith.constant 0 : index
    %1 = vector.load %arg6[%c0, %c0_0, %c0_1] : memref<2x8x290xf32, #tpu.memory_space<vmem>>, vector<2x8x17xf32>
    tpu.vector_store %arg6[%c0, %c0_0, %c0_1], %0 {strides = array<i32>} : memref<2x8x290xf32, #tpu.memory_space<vmem>>, vector<2x8x17xf32>,
    %c0_2 = arith.constant 0 : index
    %c0_3 = arith.constant 0 : index
    %c273 = arith.constant 273 : index
    %2 = vector.load %arg6[%c0_2, %c0_3, %c273] : memref<2x8x290xf32, #tpu.memory_space<vmem>>, vector<2x8x17xf32>
    tpu.vector_store %arg6[%c0_2, %c0_3, %c273], %0 {strides = array<i32>} : memref<2x8x290xf32, #tpu.memory_space<vmem>>, vector<2x8x17xf32>,
    %cst_4 = arith.constant 0.000000e+00 : f32
    %3 = vector.broadcast %cst_4 : f32 to vector<2x4x256xf32>
    %c0_5 = arith.constant 0 : index
    %c4 = arith.constant 4 : index
    %c17 = arith.constant 17 : index
    %4 = vector.load %arg6[%c0_5, %c4, %c17] : memref<2x8x290xf32, #tpu.memory_space<vmem>>, vector<2x4x256xf32>
    tpu.vector_store %arg6[%c0_5, %c4, %c17], %3 {strides = array<i32>} : memref<2x8x290xf32, #tpu.memory_space<vmem>>, vector<2x4x256xf32>,
    %c0_6 = arith.constant 0 : index
    %c0_7 = arith.constant 0 : index
    %c0_8 = arith.constant 0 : index
    %5 = vector.load %arg1[%c0_6, %c0_7, %c0_8] : memref<2x4x256xf32, #tpu.memory_space<vmem>>, vector<2x4x256xf32>
    %c0_9 = arith.constant 0 : index
    %c0_10 = arith.constant 0 : index
    %c17_11 = arith.constant 17 : index
    %6 = vector.load %arg6[%c0_9, %c0_10, %c17_11] : memref<2x8x290xf32, #tpu.memory_space<vmem>>, vector<2x4x256xf32>
    tpu.vector_store %arg6[%c0_9, %c0_10, %c17_11], %5 {strides = array<i32>} : memref<2x8x290xf32, #tpu.memory_space<vmem>>, vector<2x4x256xf32>,
    %c0_12 = arith.constant 0 : index
    %c0_13 = arith.constant 0 : index
    %7 = vector.load %arg4[%c0_12, %c0_13] : memref<2x256xf32, #tpu.memory_space<vmem>>, vector<1x256xf32>
    %c1 = arith.constant 1 : index
    %c0_14 = arith.constant 0 : index
    %8 = vector.load %arg4[%c1, %c0_14] : memref<2x256xf32, #tpu.memory_space<vmem>>, vector<1x256xf32>
    %c0_15 = arith.constant 0 : index
    %c0_16 = arith.constant 0 : index
    %c0_17 = arith.constant 0 : index
    %9 = vector.load %arg6[%c0_15, %c0_16, %c0_17] : memref<2x8x290xf32, #tpu.memory_space<vmem>>, vector<2x8x256xf32>
    %10 = vector.shape_cast %7 : vector<1x256xf32> to vector<1x1x256xf32>
    %11 = vector.broadcast %10 : vector<1x1x256xf32> to vector<2x8x256xf32>
    %12 = arith.mulf %9, %11 : vector<2x8x256xf32>
    %13 = vector.extract_strided_slice %12 {offsets = [0, 0, 0], sizes = [1, 8, 256], strides = [1, 1, 1]} : vector<2x8x256xf32> to vector<1x8x256xf32>
    %14 = vector.shape_cast %13 : vector<1x8x256xf32> to vector<8x256xf32>
    %c0_18 = arith.constant 0 : index
    %c0_19 = arith.constant 0 : index
    %15 = vector.load %arg7[%c0_18, %c0_19] : memref<72x512xf32, #tpu.memory_space<vmem>>, vector<8x256xf32>
    tpu.vector_store %arg7[%c0_18, %c0_19], %14 {strides = array<i32>} : memref<72x512xf32, #tpu.memory_space<vmem>>, vector<8x256xf32>,
    %16 = vector.extract_strided_slice %12 {offsets = [1, 0, 0], sizes = [1, 8, 256], strides = [1, 1, 1]} : vector<2x8x256xf32> to vector<1x8x256xf32>
    %17 = vector.shape_cast %16 : vector<1x8x256xf32> to vector<8x256xf32>
    %c0_20 = arith.constant 0 : index
    %c256 = arith.constant 256 : index
    %18 = vector.load %arg7[%c0_20, %c256] : memref<72x512xf32, #tpu.memory_space<vmem>>, vector<8x256xf32>
    tpu.vector_store %arg7[%c0_20, %c256], %17 {strides = array<i32>} : memref<72x512xf32, #tpu.memory_space<vmem>>, vector<8x256xf32>,
    %c0_21 = arith.constant 0 : index
    %c0_22 = arith.constant 0 : index
    %c1_23 = arith.constant 1 : index
    %19 = vector.load %arg6[%c0_21, %c0_22, %c1_23] : memref<2x8x290xf32, #tpu.memory_space<vmem>>, vector<2x8x256xf32>
    %20 = vector.extract_strided_slice %19 {offsets = [0, 0, 0], sizes = [1, 8, 256], strides = [1, 1, 1]} : vector<2x8x256xf32> to vector<1x8x256xf32>
    %21 = vector.shape_cast %20 : vector<1x8x256xf32> to vector<8x256xf32>
    %c8 = arith.constant 8 : index
    %c0_24 = arith.constant 0 : index
    %22 = vector.load %arg7[%c8, %c0_24] : memref<72x512xf32, #tpu.memory_space<vmem>>, vector<8x256xf32>
    tpu.vector_store %arg7[%c8, %c0_24], %21 {strides = array<i32>} : memref<72x512xf32, #tpu.memory_space<vmem>>, vector<8x256xf32>,
    %23 = vector.extract_strided_slice %19 {offsets = [1, 0, 0], sizes = [1, 8, 256], strides = [1, 1, 1]} : vector<2x8x256xf32> to vector<1x8x256xf32>
    %24 = vector.shape_cast %23 : vector<1x8x256xf32> to vector<8x256xf32>
    %c8_25 = arith.constant 8 : index
    %c256_26 = arith.constant 256 : index
    %25 = vector.load %arg7[%c8_25, %c256_26] : memref<72x512xf32, #tpu.memory_space<vmem>>, vector<8x256xf32>
    tpu.vector_store %arg7[%c8_25, %c256_26], %24 {strides = array<i32>} : memref<72x512xf32, #tpu.memory_space<vmem>>, vector<8x256xf32>,
    %c0_27 = arith.constant 0 : index
    %c0_28 = arith.constant 0 : index
    %c2 = arith.constant 2 : index
    %26 = vector.load %arg6[%c0_27, %c0_28, %c2] : memref<2x8x290xf32, #tpu.memory_space<vmem>>, vector<2x8x256xf32>
    %27 = vector.shape_cast %8 : vector<1x256xf32> to vector<1x1x256xf32>
    %28 = vector.broadcast %27 : vector<1x1x256xf32> to vector<2x8x256xf32>
    %29 = arith.mulf %26, %28 : vector<2x8x256xf32>
    %30 = vector.extract_strided_slice %29 {offsets = [0, 0, 0], sizes = [1, 8, 256], strides = [1, 1, 1]} : vector<2x8x256xf32> to vector<1x8x256xf32>
    %31 = vector.shape_cast %30 : vector<1x8x256xf32> to vector<8x256xf32>
    %c16 = arith.constant 16 : index
    %c0_29 = arith.constant 0 : index
    %32 = vector.load %arg7[%c16, %c0_29] : memref<72x512xf32, #tpu.memory_space<vmem>>, vector<8x256xf32>
    tpu.vector_store %arg7[%c16, %c0_29], %31 {strides = array<i32>} : memref<72x512xf32, #tpu.memory_space<vmem>>, vector<8x256xf32>,
    %33 = vector.extract_strided_slice %29 {offsets = [1, 0, 0], sizes = [1, 8, 256], strides = [1, 1, 1]} : vector<2x8x256xf32> to vector<1x8x256xf32>
    %34 = vector.shape_cast %33 : vector<1x8x256xf32> to vector<8x256xf32>
    %c16_30 = arith.constant 16 : index
    %c256_31 = arith.constant 256 : index
    %35 = vector.load %arg7[%c16_30, %c256_31] : memref<72x512xf32, #tpu.memory_space<vmem>>, vector<8x256xf32>
    tpu.vector_store %arg7[%c16_30, %c256_31], %34 {strides = array<i32>} : memref<72x512xf32, #tpu.memory_space<vmem>>, vector<8x256xf32>,
    %c0_32 = arith.constant 0 : index
    %c0_33 = arith.constant 0 : index
    %c16_34 = arith.constant 16 : index
    %36 = vector.load %arg6[%c0_32, %c0_33, %c16_34] : memref<2x8x290xf32, #tpu.memory_space<vmem>>, vector<2x8x256xf32>
    %37 = vector.shape_cast %7 : vector<1x256xf32> to vector<1x1x256xf32>
    %38 = vector.broadcast %37 : vector<1x1x256xf32> to vector<2x8x256xf32>
    %39 = arith.mulf %36, %38 : vector<2x8x256xf32>
    %40 = vector.extract_strided_slice %39 {offsets = [0, 0, 0], sizes = [1, 8, 256], strides = [1, 1, 1]} : vector<2x8x256xf32> to vector<1x8x256xf32>
    %41 = vector.shape_cast %40 : vector<1x8x256xf32> to vector<8x256xf32>
    %c24 = arith.constant 24 : index
    %c0_35 = arith.constant 0 : index
    %42 = vector.load %arg7[%c24, %c0_35] : memref<72x512xf32, #tpu.memory_space<vmem>>, vector<8x256xf32>
    tpu.vector_store %arg7[%c24, %c0_35], %41 {strides = array<i32>} : memref<72x512xf32, #tpu.memory_space<vmem>>, vector<8x256xf32>,
    %43 = vector.extract_strided_slice %39 {offsets = [1, 0, 0], sizes = [1, 8, 256], strides = [1, 1, 1]} : vector<2x8x256xf32> to vector<1x8x256xf32>
    %44 = vector.shape_cast %43 : vector<1x8x256xf32> to vector<8x256xf32>
    %c24_36 = arith.constant 24 : index
    %c256_37 = arith.constant 256 : index
    %45 = vector.load %arg7[%c24_36, %c256_37] : memref<72x512xf32, #tpu.memory_space<vmem>>, vector<8x256xf32>
    tpu.vector_store %arg7[%c24_36, %c256_37], %44 {strides = array<i32>} : memref<72x512xf32, #tpu.memory_space<vmem>>, vector<8x256xf32>,
    %c0_38 = arith.constant 0 : index
    %c0_39 = arith.constant 0 : index
    %c17_40 = arith.constant 17 : index
    %46 = vector.load %arg6[%c0_38, %c0_39, %c17_40] : memref<2x8x290xf32, #tpu.memory_space<vmem>>, vector<2x8x256xf32>
    %47 = vector.extract_strided_slice %46 {offsets = [0, 0, 0], sizes = [1, 8, 256], strides = [1, 1, 1]} : vector<2x8x256xf32> to vector<1x8x256xf32>
    %48 = vector.shape_cast %47 : vector<1x8x256xf32> to vector<8x256xf32>
    %c32 = arith.constant 32 : index
    %c0_41 = arith.constant 0 : index
    %49 = vector.load %arg7[%c32, %c0_41] : memref<72x512xf32, #tpu.memory_space<vmem>>, vector<8x256xf32>
    tpu.vector_store %arg7[%c32, %c0_41], %48 {strides = array<i32>} : memref<72x512xf32, #tpu.memory_space<vmem>>, vector<8x256xf32>,
    %50 = vector.extract_strided_slice %46 {offsets = [1, 0, 0], sizes = [1, 8, 256], strides = [1, 1, 1]} : vector<2x8x256xf32> to vector<1x8x256xf32>
    %51 = vector.shape_cast %50 : vector<1x8x256xf32> to vector<8x256xf32>
    %c32_42 = arith.constant 32 : index
    %c256_43 = arith.constant 256 : index
    %52 = vector.load %arg7[%c32_42, %c256_43] : memref<72x512xf32, #tpu.memory_space<vmem>>, vector<8x256xf32>
    tpu.vector_store %arg7[%c32_42, %c256_43], %51 {strides = array<i32>} : memref<72x512xf32, #tpu.memory_space<vmem>>, vector<8x256xf32>,
    %c0_44 = arith.constant 0 : index
    %c0_45 = arith.constant 0 : index
    %c18 = arith.constant 18 : index
    %53 = vector.load %arg6[%c0_44, %c0_45, %c18] : memref<2x8x290xf32, #tpu.memory_space<vmem>>, vector<2x8x256xf32>
    %54 = vector.shape_cast %8 : vector<1x256xf32> to vector<1x1x256xf32>
    %55 = vector.broadcast %54 : vector<1x1x256xf32> to vector<2x8x256xf32>
    %56 = arith.mulf %53, %55 : vector<2x8x256xf32>
    %57 = vector.extract_strided_slice %56 {offsets = [0, 0, 0], sizes = [1, 8, 256], strides = [1, 1, 1]} : vector<2x8x256xf32> to vector<1x8x256xf32>
    %58 = vector.shape_cast %57 : vector<1x8x256xf32> to vector<8x256xf32>
    %c40 = arith.constant 40 : index
    %c0_46 = arith.constant 0 : index
    %59 = vector.load %arg7[%c40, %c0_46] : memref<72x512xf32, #tpu.memory_space<vmem>>, vector<8x256xf32>
    tpu.vector_store %arg7[%c40, %c0_46], %58 {strides = array<i32>} : memref<72x512xf32, #tpu.memory_space<vmem>>, vector<8x256xf32>,
    %60 = vector.extract_strided_slice %56 {offsets = [1, 0, 0], sizes = [1, 8, 256], strides = [1, 1, 1]} : vector<2x8x256xf32> to vector<1x8x256xf32>
    %61 = vector.shape_cast %60 : vector<1x8x256xf32> to vector<8x256xf32>
    %c40_47 = arith.constant 40 : index
    %c256_48 = arith.constant 256 : index
    %62 = vector.load %arg7[%c40_47, %c256_48] : memref<72x512xf32, #tpu.memory_space<vmem>>, vector<8x256xf32>
    tpu.vector_store %arg7[%c40_47, %c256_48], %61 {strides = array<i32>} : memref<72x512xf32, #tpu.memory_space<vmem>>, vector<8x256xf32>,
    %c0_49 = arith.constant 0 : index
    %c0_50 = arith.constant 0 : index
    %c32_51 = arith.constant 32 : index
    %63 = vector.load %arg6[%c0_49, %c0_50, %c32_51] : memref<2x8x290xf32, #tpu.memory_space<vmem>>, vector<2x8x256xf32>
    %64 = vector.shape_cast %7 : vector<1x256xf32> to vector<1x1x256xf32>
    %65 = vector.broadcast %64 : vector<1x1x256xf32> to vector<2x8x256xf32>
    %66 = arith.mulf %63, %65 : vector<2x8x256xf32>
    %67 = vector.extract_strided_slice %66 {offsets = [0, 0, 0], sizes = [1, 8, 256], strides = [1, 1, 1]} : vector<2x8x256xf32> to vector<1x8x256xf32>
    %68 = vector.shape_cast %67 : vector<1x8x256xf32> to vector<8x256xf32>
    %c48 = arith.constant 48 : index
    %c0_52 = arith.constant 0 : index
    %69 = vector.load %arg7[%c48, %c0_52] : memref<72x512xf32, #tpu.memory_space<vmem>>, vector<8x256xf32>
    tpu.vector_store %arg7[%c48, %c0_52], %68 {strides = array<i32>} : memref<72x512xf32, #tpu.memory_space<vmem>>, vector<8x256xf32>,
    %70 = vector.extract_strided_slice %66 {offsets = [1, 0, 0], sizes = [1, 8, 256], strides = [1, 1, 1]} : vector<2x8x256xf32> to vector<1x8x256xf32>
    %71 = vector.shape_cast %70 : vector<1x8x256xf32> to vector<8x256xf32>
    %c48_53 = arith.constant 48 : index
    %c256_54 = arith.constant 256 : index
    %72 = vector.load %arg7[%c48_53, %c256_54] : memref<72x512xf32, #tpu.memory_space<vmem>>, vector<8x256xf32>
    tpu.vector_store %arg7[%c48_53, %c256_54], %71 {strides = array<i32>} : memref<72x512xf32, #tpu.memory_space<vmem>>, vector<8x256xf32>,
    %c0_55 = arith.constant 0 : index
    %c0_56 = arith.constant 0 : index
    %c33 = arith.constant 33 : index
    %73 = vector.load %arg6[%c0_55, %c0_56, %c33] : memref<2x8x290xf32, #tpu.memory_space<vmem>>, vector<2x8x256xf32>
    %74 = vector.extract_strided_slice %73 {offsets = [0, 0, 0], sizes = [1, 8, 256], strides = [1, 1, 1]} : vector<2x8x256xf32> to vector<1x8x256xf32>
    %75 = vector.shape_cast %74 : vector<1x8x256xf32> to vector<8x256xf32>
    %c56 = arith.constant 56 : index
    %c0_57 = arith.constant 0 : index
    %76 = vector.load %arg7[%c56, %c0_57] : memref<72x512xf32, #tpu.memory_space<vmem>>, vector<8x256xf32>
    tpu.vector_store %arg7[%c56, %c0_57], %75 {strides = array<i32>} : memref<72x512xf32, #tpu.memory_space<vmem>>, vector<8x256xf32>,
    %77 = vector.extract_strided_slice %73 {offsets = [1, 0, 0], sizes = [1, 8, 256], strides = [1, 1, 1]} : vector<2x8x256xf32> to vector<1x8x256xf32>
    %78 = vector.shape_cast %77 : vector<1x8x256xf32> to vector<8x256xf32>
    %c56_58 = arith.constant 56 : index
    %c256_59 = arith.constant 256 : index
    %79 = vector.load %arg7[%c56_58, %c256_59] : memref<72x512xf32, #tpu.memory_space<vmem>>, vector<8x256xf32>
    tpu.vector_store %arg7[%c56_58, %c256_59], %78 {strides = array<i32>} : memref<72x512xf32, #tpu.memory_space<vmem>>, vector<8x256xf32>,
    %c0_60 = arith.constant 0 : index
    %c0_61 = arith.constant 0 : index
    %c34 = arith.constant 34 : index
    %80 = vector.load %arg6[%c0_60, %c0_61, %c34] : memref<2x8x290xf32, #tpu.memory_space<vmem>>, vector<2x8x256xf32>
    %81 = vector.shape_cast %8 : vector<1x256xf32> to vector<1x1x256xf32>
    %82 = vector.broadcast %81 : vector<1x1x256xf32> to vector<2x8x256xf32>
    %83 = arith.mulf %80, %82 : vector<2x8x256xf32>
    %84 = vector.extract_strided_slice %83 {offsets = [0, 0, 0], sizes = [1, 8, 256], strides = [1, 1, 1]} : vector<2x8x256xf32> to vector<1x8x256xf32>
    %85 = vector.shape_cast %84 : vector<1x8x256xf32> to vector<8x256xf32>
    %c64 = arith.constant 64 : index
    %c0_62 = arith.constant 0 : index
    %86 = vector.load %arg7[%c64, %c0_62] : memref<72x512xf32, #tpu.memory_space<vmem>>, vector<8x256xf32>
    tpu.vector_store %arg7[%c64, %c0_62], %85 {strides = array<i32>} : memref<72x512xf32, #tpu.memory_space<vmem>>, vector<8x256xf32>,
    %87 = vector.extract_strided_slice %83 {offsets = [1, 0, 0], sizes = [1, 8, 256], strides = [1, 1, 1]} : vector<2x8x256xf32> to vector<1x8x256xf32>
    %88 = vector.shape_cast %87 : vector<1x8x256xf32> to vector<8x256xf32>
    %c64_63 = arith.constant 64 : index
    %c256_64 = arith.constant 256 : index
    %89 = vector.load %arg7[%c64_63, %c256_64] : memref<72x512xf32, #tpu.memory_space<vmem>>, vector<8x256xf32>
    tpu.vector_store %arg7[%c64_63, %c256_64], %88 {strides = array<i32>} : memref<72x512xf32, #tpu.memory_space<vmem>>, vector<8x256xf32>,
    %c0_65 = arith.constant 0 : index
    %c0_66 = arith.constant 0 : index
    %90 = vector.load %arg2[%c0_65, %c0_66] : memref<8x72xf32, #tpu.memory_space<vmem>>, vector<8x72xf32>
    %c0_67 = arith.constant 0 : index
    %c0_68 = arith.constant 0 : index
    %91 = vector.load %arg7[%c0_67, %c0_68] : memref<72x512xf32, #tpu.memory_space<vmem>>, vector<72x512xf32>
    %cst_69 = arith.constant dense<0.000000e+00> : vector<8x512xf32>
    %92 = tpu.matmul %90, %91, %cst_69 {dimension_numbers = #tpu.dot_dimension_numbers<[1], [0], [0], [1], [0, 0, 1, 1], [], []>} : vector<8x72xf32>, vector<72x512xf32>, vector<8x512xf32> -> vector<8x512xf32>
    %c0_70 = arith.constant 0 : index
    %c0_71 = arith.constant 0 : index
    %93 = vector.load %arg3[%c0_70, %c0_71] : memref<8x1xf32, #tpu.memory_space<vmem>>, vector<8x1xf32>
    %94 = vector.broadcast %93 : vector<8x1xf32> to vector<8x512xf32>
    %95 = arith.addf %92, %94 : vector<8x512xf32>
    %cst_72 = arith.constant 0.000000e+00 : f32
    %96 = vector.broadcast %cst_72 : f32 to vector<8x512xf32>
    %97 = arith.maximumf %95, %96 : vector<8x512xf32>
    %98 = vector.extract_strided_slice %97 {offsets = [0, 0], sizes = [8, 256], strides = [1, 1]} : vector<8x512xf32> to vector<8x256xf32>
    %c0_73 = arith.constant 0 : index
    %c0_74 = arith.constant 0 : index
    %c0_75 = arith.constant 0 : index
    %99 = vector.load %arg5[%c0_73, %c0_74, %c0_75] : memref<2x8x256xf32, #tpu.memory_space<vmem>>, vector<1x8x256xf32>
    %100 = vector.shape_cast %99 : vector<1x8x256xf32> to vector<8x256xf32>
    %101 = vector.shape_cast %98 : vector<8x256xf32> to vector<1x8x256xf32>
    tpu.vector_store %arg5[%c0_73, %c0_74, %c0_75], %101 {strides = array<i32>} : memref<2x8x256xf32, #tpu.memory_space<vmem>>, vector<1x8x256xf32>,
    %102 = vector.extract_strided_slice %97 {offsets = [0, 256], sizes = [8, 256], strides = [1, 1]} : vector<8x512xf32> to vector<8x256xf32>
    %c1_76 = arith.constant 1 : index
    %c0_77 = arith.constant 0 : index
    %c0_78 = arith.constant 0 : index
    %103 = vector.load %arg5[%c1_76, %c0_77, %c0_78] : memref<2x8x256xf32, #tpu.memory_space<vmem>>, vector<1x8x256xf32>
    %104 = vector.shape_cast %103 : vector<1x8x256xf32> to vector<8x256xf32>
    %105 = vector.shape_cast %102 : vector<8x256xf32> to vector<1x8x256xf32>
    tpu.vector_store %arg5[%c1_76, %c0_77, %c0_78], %105 {strides = array<i32>} : memref<2x8x256xf32, #tpu.memory_space<vmem>>, vector<1x8x256xf32>,
    return
  }
  func.func @transform_0(%arg0: i32) -> (i32, i32, i32) {
    %c0_i32 = arith.constant 0 : i32
    %c0_i32_0 = arith.constant 0 : i32
    %c0_i32_1 = arith.constant 0 : i32
    return %arg0, %c0_i32, %c0_i32_0 : i32, i32, i32
  }
  func.func @transform_1(%arg0: i32) -> (i32, i32) {
    %c0_i32 = arith.constant 0 : i32
    %c0_i32_0 = arith.constant 0 : i32
    %c0_i32_1 = arith.constant 0 : i32
    return %c0_i32, %c0_i32_0 : i32, i32
  }
  func.func @transform_2(%arg0: i32) -> (i32, i32) {
    %c0_i32 = arith.constant 0 : i32
    %c0_i32_0 = arith.constant 0 : i32
    %c0_i32_1 = arith.constant 0 : i32
    return %c0_i32, %c0_i32_0 : i32, i32
  }
  func.func @transform_3(%arg0: i32) -> (i32, i32) {
    %c0_i32 = arith.constant 0 : i32
    %c0_i32_0 = arith.constant 0 : i32
    %c0_i32_1 = arith.constant 0 : i32
    return %c0_i32, %c0_i32_0 : i32, i32
  }
  func.func @transform_4(%arg0: i32) -> (i32, i32, i32) {
    %c0_i32 = arith.constant 0 : i32
    %c0_i32_0 = arith.constant 0 : i32
    %c0_i32_1 = arith.constant 0 : i32
    return %arg0, %c0_i32, %c0_i32_0 : i32, i32, i32
  }
}

</mosaic_0001>

<bundles_post_ra>
// kernel: tpu_custom_call.1
= control target key start
LH: loop header
LB: loop body
LE: loop exit
PB: predicated region body
PF: predicated region fallthrough
CT: control target
= control target key end

     0   :  { %9 = vsyncpa [#allocation5], 0  ;;  %s1155_s0 = inlined_call_operand.hbm [shape: f32[2,4,256], index: 0, kind: input, shape index: {}]   ;;  %s1156_s1 = inlined_call_operand.vmem [shape: f32[8,72], index: 1, kind: input, shape index: {}]   ;;  %s1157_s2 = inlined_call_operand.vmem [shape: f32[8,1], index: 2, kind: input, shape index: {}]   ;;  %s1158_s3 = inlined_call_operand.vmem [shape: f32[2,256], index: 3, kind: input, shape index: {}]   ;;  %s1159_s4 = inlined_call_operand.hbm [shape: f32[2,8,256], index: 4, kind: output, shape index: {}]  }
   0x1   :  { %10 = vsyncpa [#allocation6], 0  ;;  %s910_s15 = smov [#allocation4]   ;;  %s862_s19 = scalar_lea.hbm %s1155_s0, 256 }
   0x2   :  { %s16_s16 = sshll.u32 %s910_s15, 4  ;;  %p863_p0 = scmp.ne.s32.totalorder %s1155_s0, %s862_s19  ;;  %s17_s16 = int_to_ptr.vmem [resolvable:$true] %s16_s16 }
   0x3   :  { %p866_p1 = scmp.lt.u32.totalorder %s862_s19, %s1155_s0 }
   0x5   :  { %p868_p2 = pnand %p866_p1, %p863_p0 }
   0x7   :  { %871 = shalt.err (!%p868_p2)
}
   0x8   :  { %s872_s24 = scalar_lea.vmem %s17_s16, 256  ;;  %p877_p4 = scmp.lt.s32.totalorder %s17_s16, %s17_s16 }
   0x9   :  { %p873_p3 = scmp.ne.s32.totalorder %s17_s16, %s872_s24  ;;  %p878_p5 = scmp.lt.s32.totalorder %s872_s24, %s872_s24 }
   0xb   :  { %p879_p6 = por %p878_p5, %p877_p4 }
   0xd   :  { %p880_p7 = pnand %p879_p6, %p873_p3 }
   0xf   :  { %883 = shalt.err (!%p880_p7)
}
  0x10   :  { %s911_s25 = smov 128   ;;  %s912_s26 = smov 8  }
  0x11   :  { %22 = dma.hbm_to_vmem [thread:$0]  %s1155_s0, 256, %s17_s16, [#allocation5], %s911_s25, %s911_s25, %s912_s26  }
  0x12   :  { %906 = dma.done.wait [#allocation5], 256  }
  0x13   :  { %907 = vsyncadd [#allocation5], 4294967040  ;;  %v84_v0 = vlaneseq  ;;  %vm32_vm0 = vcmask 138240   ;;  %vm38_vm1 = vcmask 1047692   ;;  %v913_v1 = vmov 0.0   ;;  %v47_v3 = vld [vmem:[#allocation4 + $0x8] sm:$0xff] }
  0x14   :  { %34 = vst.msk [vmem:[#allocation2 + $0x18] sm:$0xff] %vm32_vm0, %v913_v1  ;;  %33 = vst.msk [vmem:[#allocation2] sm:$0xff] %vm32_vm0, %v913_v1  ;;  %vm35_vm2 = vcmask 277640   ;;  %vm41_vm3 = vcmask 138244   ;;  %664 = vmatprep.mubr.f32.mxu1 %v913_v1  ;;  %593 = vmatprep.mubr.f32.mxu0 %v913_v1  ;;  %v46_v4 = vld [vmem:[#allocation4] sm:$0xff]  ;;  %s914_s0 = smov 17   ;;  %v51_v5 = vcombine.high %v47_v3, %v47_v3 }
  0x15   :  { %40 = vst [vmem:[#allocation2 + $0x8] sm:$0xf0] %v913_v1  ;;  %44 = vst [vmem:[#allocation2 + $0x20] sm:$0xf0] %v913_v1  ;;  %v85_v2 = vshrl.u32 %v84_v0, 7  ;;  %56 = vrot.lane.b32.xlu1 %v47_v3, %s914_s0  ;;  %52 = vrot.lane.b32.xlu0 %v46_v4, %s914_s0  ;;  %v50_v6 = vcombine.high %v46_v4, %v46_v4  ;;  %s915_s7 = smov 2  }
  0x16   :  { %43 = vst.msk [vmem:[#allocation2 + $0x18] sm:$0xf0] %vm38_vm1, %v913_v1  ;;  %39 = vst.msk [vmem:[#allocation2] sm:$0xf0] %vm38_vm1, %v913_v1  ;;  %s916_s8 = smov 16   ;;  %s917_s9 = smov 18  }
  0x17   :  { %37 = vst.msk [vmem:[#allocation2 + $0x28] sm:$0xff] %vm35_vm2, %v913_v1  ;;  %36 = vst.msk [vmem:[#allocation2 + $0x10] sm:$0xff] %vm35_vm2, %v913_v1  ;;  %v90_v7 = vsub.s32 1, %v85_v2  ;;  %v86_v8 = vsub.s32 0, %v85_v2  ;;  %s918_s10 = smov 32   ;;  %vm68_vm4 = vcmask 1043592  }
  0x18   :  { %45 = vst.msk [vmem:[#allocation2 + $0x28] sm:$0xf0] %vm41_vm3, %v913_v1  ;;  %42 = vst.msk [vmem:[#allocation2 + $0x10] sm:$0xf0] %vm41_vm3, %v913_v1  ;;  %vm71_vm5 = vcmask 134144   ;;  %s920_s11 = smov 111  }
  0x19   :  { %v697_v9 = vld [vmem:[%s1158_s3 + $0x1] ss:$2 sm:$0x3]  ;;  %58 = vrot.lane.b32.xlu1 %v51_v5, %s914_s0  ;;  %54 = vrot.lane.b32.xlu0 %v50_v6, %s914_s0  ;;  %v76_v12 = vld [vmem:[%s1158_s3] ss:$2 sm:$0x3] }
  0x1a   :  { %v153_v10 = vrot.slane %v697_v9, %v90_v7  ;;  %v149_v11 = vrot.slane %v697_v9, %v86_v8  ;;  %v976_v13 = vrot.slane %v76_v12, %v90_v7  ;;  %v978_v14 = vrot.slane %v76_v12, %v86_v8  ;;  %s919_s3 = smov 34   ;;  %s921_s12 = smov 127  }
  0x1b   :  { %s922_s13 = smov 126   ;;  %s923_s14 = smov 95   ;;  %vm158_vm6 = vcmask 15360   ;;  %vm210_vm7 = vcmask 130048   ;;  %vm299_vm8 = vcmask 146432   ;;  %vm351_vm9 = vcmask 261120  }
  0x1c   :  { %s924_s15 = smov 112   ;;  %s925_s16 = smov 110   ;;  %vm440_vm10 = vcmask 277504   ;;  %vm117_vm11 = vcmask 1039360   ;;  %vm178_vm12 = vcmask 1031168   ;;  %vm230_vm13 = vcmask 916480  }
  0x1d   :  { %156 = vrot.lane.b32.xlu1 %v153_v10, %s915_s7  ;;  %154 = vrot.lane.b32.xlu0 %v149_v11, %s915_s7  ;;  %s926_s17 = smov 96   ;;  %s927_s18 = smov 94   ;;  %vm267_vm14 = vcmask 908288   ;;  %vm319_vm15 = vcmask 900096   ;;  %vm408_vm1 = vcmask 777216   ;;  %vm460_vm2 = vcmask 769024  }
  0x1e   :  { %vm525_vm3 = vcmask 588800   ;;  %s929_s22 = smov [#allocation7]  }
  0x1f   :  { %s685_s23 = sshll.u32 %s929_s22, 4  ;;  %s686_s23 = int_to_ptr.vmem [resolvable:$true] %s685_s23 }
  0x20   :  { %p889_p9 = scmp.lt.s32.totalorder %s686_s23, %s686_s23 }
  0x21   :  { %208 = vrot.lane.b32.xlu1 %v976_v13, %s916_s8  ;;  %206 = vrot.lane.b32.xlu0 %v978_v14, %s916_s8 }
  0x25   :  { %297 = vrot.lane.b32.xlu1 %v153_v10, %s917_s9  ;;  %295 = vrot.lane.b32.xlu0 %v149_v11, %s917_s9 }
  0x29   :  { %349 = vrot.lane.b32.xlu1 %v976_v13, %s918_s10  ;;  %347 = vrot.lane.b32.xlu0 %v978_v14, %s918_s10 }
  0x2d   :  { %438 = vrot.lane.b32.xlu1 %v153_v10, %s919_s3  ;;  %436 = vrot.lane.b32.xlu0 %v149_v11, %s919_s3 }
  0x87   :  { %v57_v15 = vpop.permute.xlu1 %56  ;;  %v53_v16 = vpop.permute.xlu0 %52 }
  0x88   :  { %73 = vst.msk [vmem:[#allocation2 + $0x18] sm:$0xf] %vm68_vm4, %v57_v15  ;;  %69 = vst.msk [vmem:[#allocation2] sm:$0xf] %vm68_vm4, %v53_v16 }
  0x8b   :  { %v59_v17 = vpop.permute.xlu1 %58  ;;  %v55_v18 = vpop.permute.xlu0 %54 }
  0x8c   :  { %v61_v19 = vsel %vm32_vm0, %v57_v15, %v59_v17  ;;  %75 = vst.msk [vmem:[#allocation2 + $0x28] sm:$0xf] %vm71_vm5, %v59_v17  ;;  %v60_v20 = vsel %vm32_vm0, %v53_v16, %v55_v18  ;;  %72 = vst.msk [vmem:[#allocation2 + $0x10] sm:$0xf] %vm71_vm5, %v55_v18  ;;  %vm371_vm0 = vcmask 785408  }
  0x8d   :  { %74 = vst [vmem:[#allocation2 + $0x20] sm:$0xf] %v61_v19  ;;  %70 = vst [vmem:[#allocation2 + $0x8] sm:$0xf] %v60_v20 }
  0x8f   :  { %v155_v21 = vpop.permute.xlu0 %154  ;;  %v988_v22 = vld [vmem:[#allocation2] sm:$0xff]  ;;  %v990_v23 = vld [vmem:[#allocation2 + $0x18] sm:$0xff]  ;;  %v157_v27 = vpop.permute.xlu1 %156 }
  0x90   :  { %v163_v24 = vmul.f32 %v155_v21, %v988_v22  ;;  %v166_v25 = vmul.f32 %v155_v21, %v990_v23  ;;  %v758_v26 = vpack.i.bf16 %v990_v23, %v988_v22  ;;  %v159_v50 = vsel %vm158_vm6, %v155_v21, %v157_v27 }
  0x91   :  { %v928_v21 = vmov 0  }
  0x92   :  { %759 = vrot.lane.b32.xlu1 %v758_v26, %s920_s11  ;;  %754 = vrot.lane.b32.xlu0 %v758_v26, %s921_s12  ;;  %v768_v29 = vpack.i.bf16 %v166_v25, %v163_v24 }
  0x93   :  { %v207_v28 = vpop.permute.xlu0 %206  ;;  %v209_v33 = vpop.permute.xlu1 %208  ;;  %v141_v41 = vld [vmem:[#allocation2 + $0x10] sm:$0xff]  ;;  %v1010_v45 = vld [vmem:[#allocation2 + $0x28] sm:$0xff]  ;;  %858 = vset.pattern.permute.xlu1 %v928_v21  ;;  %859 = vset.pattern.permute.xlu0 %v928_v21 }
  0x94   :  { %v215_v30 = vmul.f32 %v207_v28, %v988_v22  ;;  %v218_v31 = vmul.f32 %v207_v28, %v990_v23  ;;  %v1007_v42 = vld [vmem:[#allocation2 + $0x8] sm:$0xff]  ;;  %v1012_v46 = vld [vmem:[#allocation2 + $0x20] sm:$0xff]  ;;  %v165_v52 = vmul.f32 %v157_v27, %v141_v41  ;;  %v211_v54 = vsel %vm210_vm7, %v207_v28, %v209_v33 }
  0x95   :  { %v788_v47 = vpack.i.bf16 %v141_v41, %v1007_v42  ;;  %v793_v48 = vpack.i.bf16 %v1010_v45, %v1012_v46  ;;  %v164_v53 = vmul.f32 %v159_v50, %v1007_v42  ;;  %v168_v55 = vmul.f32 %v157_v27, %v1010_v45  ;;  %v519_v28 = vld [vmem:[%s1157_s2] sm:$0xff] }
  0x96   :  { %769 = vrot.lane.b32.xlu1 %v768_v29, %s922_s13  ;;  %764 = vrot.lane.b32.xlu0 %v758_v26, %s923_s14  ;;  %v773_v36 = vpack.i.bf16 %v218_v31, %v215_v30  ;;  %v167_v56 = vmul.f32 %v159_v50, %v1012_v46  ;;  %v217_v58 = vmul.f32 %v209_v33, %v141_v41 }
  0x97   :  { %v296_v32 = vpop.permute.xlu0 %295  ;;  %v298_v43 = vpop.permute.xlu1 %297  ;;  %v216_v59 = vmul.f32 %v211_v54, %v1007_v42  ;;  %v818_v60 = vpack.i.bf16 %v165_v52, %v164_v53  ;;  %v220_v62 = vmul.f32 %v209_v33, %v1010_v45  ;;  %v219_v63 = vmul.f32 %v211_v54, %v1012_v46 }
  0x98   :  { %v304_v34 = vmul.f32 %v296_v32, %v988_v22  ;;  %v307_v35 = vmul.f32 %v296_v32, %v990_v23  ;;  %v300_v61 = vsel %vm299_vm8, %v296_v32, %v298_v43  ;;  %v823_v0 = vpack.i.bf16 %v168_v55, %v167_v56 }
  0x99   :  { %v306_v1 = vmul.f32 %v298_v43, %v141_v41  ;;  %v305_v2 = vmul.f32 %v300_v61, %v1007_v42  ;;  %v828_v3 = vpack.i.bf16 %v217_v58, %v216_v59  ;;  %v309_v5 = vmul.f32 %v298_v43, %v1010_v45 }
  0x9a   :  { %774 = vrot.lane.b32.xlu0 %v773_v36, %s924_s15  ;;  %v778_v40 = vpack.i.bf16 %v307_v35, %v304_v34  ;;  %v308_v6 = vmul.f32 %v300_v61, %v1012_v46  ;;  %v833_v7 = vpack.i.bf16 %v220_v62, %v219_v63  ;;  %v95_v43 = vmul.f32 %v1007_v42, %v976_v13 }
  0x9b   :  { %v348_v37 = vpop.permute.xlu0 %347  ;;  %v350_v49 = vpop.permute.xlu1 %349  ;;  %v838_v10 = vpack.i.bf16 %v306_v1, %v305_v2  ;;  %v97_v53 = vmul.f32 %v1012_v46, %v976_v13  ;;  %v96_v54 = vmul.f32 %v990_v23, %v978_v14 }
  0x9c   :  { %v356_v38 = vmul.f32 %v348_v37, %v988_v22  ;;  %v359_v39 = vmul.f32 %v348_v37, %v990_v23  ;;  %v352_v4 = vsel %vm351_vm9, %v348_v37, %v350_v49  ;;  %v358_v8 = vmul.f32 %v350_v49, %v141_v41 }
  0x9d   :  { %v357_v9 = vmul.f32 %v352_v4, %v1007_v42  ;;  %v361_v11 = vmul.f32 %v350_v49, %v1010_v45  ;;  %v360_v12 = vmul.f32 %v352_v4, %v1012_v46  ;;  %v843_v16 = vpack.i.bf16 %v309_v5, %v308_v6 }
  0x9e   :  { %779 = vrot.lane.b32.xlu0 %v778_v40, %s925_s16  ;;  %v783_v44 = vpack.i.bf16 %v359_v39, %v356_v38 }
  0x9f   :  { %v439_v51 = vpop.permute.xlu1 %438  ;;  %v437_v15 = vpop.permute.xlu0 %436  ;;  %v848_v17 = vpack.i.bf16 %v358_v8, %v357_v9  ;;  %v853_v19 = vpack.i.bf16 %v361_v11, %v360_v12 }
  0xa0   :  { %784 = vrot.lane.b32.xlu1 %v783_v44, %s926_s17  ;;  %v447_v57 = vmul.f32 %v439_v51, %v141_v41  ;;  %v441_v18 = vsel %vm440_vm10, %v437_v15, %v439_v51  ;;  %v450_v24 = vmul.f32 %v439_v51, %v1010_v45  ;;  %v448_v26 = vmul.f32 %v437_v15, %v990_v23 }
  0xa1   :  { %v446_v20 = vmul.f32 %v441_v18, %v1007_v42  ;;  %v449_v25 = vmul.f32 %v441_v18, %v1012_v46  ;;  %v445_v27 = vmul.f32 %v437_v15, %v988_v22  ;;  %v94_v44 = vmul.f32 %v988_v22, %v978_v14 }
  0xa2   :  { %789 = vrot.lane.b32.xlu0 %v788_v47, %s921_s12 }
  0xa4   :  { %794 = vrot.lane.b32.xlu1 %v793_v48, %s921_s12 }
  0xa6   :  { %804 = vrot.lane.b32.xlu0 %v793_v48, %s920_s11 }
  0xa8   :  { %799 = vrot.lane.b32.xlu1 %v788_v47, %s920_s11 }
  0xaa   :  { %814 = vrot.lane.b32.xlu0 %v793_v48, %s923_s14 }
  0xac   :  { %809 = vrot.lane.b32.xlu1 %v788_v47, %s923_s14 }
  0xae   :  { %458 = vrot.lane.b32.xlu0 %v447_v57, %s927_s18 }
  0xb0   :  { %819 = vrot.lane.b32.xlu1 %v818_v60, %s922_s13 }
  0xb2   :  { %824 = vrot.lane.b32.xlu0 %v823_v0, %s922_s13 }
  0xb4   :  { %829 = vrot.lane.b32.xlu1 %v828_v3, %s924_s15 }
  0xb6   :  { %834 = vrot.lane.b32.xlu0 %v833_v7, %s924_s15 }
  0xb8   :  { %839 = vrot.lane.b32.xlu1 %v838_v10, %s925_s16 }
  0xba   :  { %844 = vrot.lane.b32.xlu0 %v843_v16, %s925_s16 }
  0xbc   :  { %849 = vrot.lane.b32.xlu1 %v848_v17, %s926_s17 }
  0xbe   :  { %854 = vrot.lane.b32.xlu0 %v853_v19, %s926_s17 }
  0xc0   :  { %456 = vrot.lane.b32.xlu1 %v446_v20, %s927_s18 }
  0xc2   :  { %474 = vrot.lane.b32.xlu0 %v450_v24, %s927_s18 }
  0xc4   :  { %472 = vrot.lane.b32.xlu1 %v449_v25, %s927_s18 }
  0xc6   :  { %470 = vrot.lane.b32.xlu0 %v448_v26, %s927_s18 }
  0xc8   :  { %454 = vrot.lane.b32.xlu1 %v445_v27, %s927_s18 }
  0xcc   :  { %522 = vperm.xlu1 %858, %v519_v28  }
 0x104   :  { %v755_v29 = vpop.permute.xlu0 %754  ;;  %v1060_v31 = vpop.permute.xlu1 %759 }
 0x105   :  { %v756_v37 = vunpack.i.l.bf16 %v755_v29  ;;  %v757_v40 = vunpack.i.h.bf16 %v755_v29  ;;  %v762_v13 = vunpack.i.h.bf16 %v1060_v31  ;;  %v761_v14 = vunpack.i.l.bf16 %v1060_v31 }
 0x108   :  { %v1058_v30 = vpop.permute.xlu0 %764  ;;  %v1064_v33 = vpop.permute.xlu1 %769 }
 0x109   :  { %v772_v23 = vunpack.i.h.bf16 %v1064_v33  ;;  %v771_v46 = vunpack.i.l.bf16 %v1064_v33  ;;  %v767_v62 = vunpack.i.h.bf16 %v1058_v30  ;;  %v766_v63 = vunpack.i.l.bf16 %v1058_v30 }
 0x10c   :  { %v1062_v32 = vpop.permute.xlu0 %774 }
 0x10d   :  { %v777_v7 = vunpack.i.h.bf16 %v1062_v32  ;;  %v776_v8 = vunpack.i.l.bf16 %v1062_v32 }
 0x110   :  { %v1066_v34 = vpop.permute.xlu0 %779 }
 0x111   :  { %v782_v9 = vunpack.i.h.bf16 %v1066_v34  ;;  %v781_v10 = vunpack.i.l.bf16 %v1066_v34 }
 0x112   :  { %v1068_v35 = vpop.permute.xlu1 %784 }
 0x113   :  { %v787_v11 = vunpack.i.h.bf16 %v1068_v35  ;;  %v786_v12 = vunpack.i.l.bf16 %v1068_v35 }
 0x114   :  { %v790_v36 = vpop.permute.xlu0 %789 }
 0x115   :  { %v792_v38 = vunpack.i.h.bf16 %v790_v36  ;;  %v791_v39 = vunpack.i.l.bf16 %v790_v36 }
 0x116   :  { %v795_v41 = vpop.permute.xlu1 %794 }
 0x117   :  { %v797_v45 = vunpack.i.h.bf16 %v795_v41  ;;  %v796_v47 = vunpack.i.l.bf16 %v795_v41  ;;  %v119_v48 = vsel %vm117_vm11, %v791_v39, %v792_v38  ;;  %v118_v49 = vsel %vm117_vm11, %v756_v37, %v791_v39 }
 0x118   :  { %v805_v50 = vpop.permute.xlu0 %804  ;;  %v700_v51 = vpack.c.bf16 %v119_v48, %v95_v43  ;;  %v702_v52 = vpack.c.bf16 %v118_v49, %v94_v44 }
 0x119   :  { %v134_v42 = vsel %vm117_vm11, %v796_v47, %v797_v45  ;;  %v133_v55 = vsel %vm117_vm11, %v757_v40, %v796_v47  ;;  %v807_v0 = vunpack.i.h.bf16 %v805_v50  ;;  %v806_v1 = vunpack.i.l.bf16 %v805_v50 }
 0x11a   :  { %v800_v22 = vpop.permute.xlu1 %799  ;;  %701 = vmatprep.subr.bf16.mxu0 %v700_v51  ;;  %v716_v56 = vpack.c.bf16 %v134_v42, %v97_v53  ;;  %v718_v57 = vpack.c.bf16 %v133_v55, %v96_v54 }
 0x11b   :  { %703 = vmatpush1.bf16.msra.mxu0 %v702_v52  ;;  %v802_v2 = vunpack.i.h.bf16 %v800_v22  ;;  %v801_v3 = vunpack.i.l.bf16 %v800_v22  ;;  %v284_v20 = vsel %vm267_vm14, %v806_v1, %v807_v0  ;;  %v283_v21 = vsel %vm267_vm14, %v762_v13, %v806_v1 }
 0x11c   :  { %717 = vmatprep.subr.bf16.mxu1 %v716_v56  ;;  %v1082_v58 = vpop.permute.xlu0 %814 }
 0x11d   :  { %719 = vmatpush1.bf16.msra.mxu1 %v718_v57  ;;  %v269_v27 = vsel %vm267_vm14, %v801_v3, %v802_v2  ;;  %v268_v28 = vsel %vm267_vm14, %v761_v14, %v801_v3  ;;  %v817_v42 = vunpack.i.h.bf16 %v1082_v58  ;;  %v816_v55 = vunpack.i.l.bf16 %v1082_v58 }
 0x11e   :  { %v1084_v59 = vpop.permute.xlu1 %809 }
 0x11f   :  { %v812_v45 = vunpack.i.h.bf16 %v1084_v59  ;;  %v811_v47 = vunpack.i.l.bf16 %v1084_v59 }
 0x120   :  { %v1086_v60 = vpop.permute.xlu0 %458 }
 0x121   :  { %v410_v1 = vsel %vm408_vm1, %v811_v47, %v812_v45  ;;  %v409_v58 = vsel %vm408_vm1, %v766_v63, %v811_v47 }
 0x122   :  { %v820_v61 = vpop.permute.xlu1 %819 }
 0x123   :  { %v822_v4 = vunpack.i.h.bf16 %v820_v61  ;;  %v821_v5 = vunpack.i.l.bf16 %v820_v61 }
 0x124   :  { %v825_v6 = vpop.permute.xlu0 %824 }
 0x125   :  { %v827_v15 = vunpack.i.h.bf16 %v825_v6  ;;  %v826_v16 = vunpack.i.l.bf16 %v825_v6  ;;  %v180_v25 = vsel %vm178_vm12, %v821_v5, %v822_v4  ;;  %v179_v26 = vsel %vm178_vm12, %v771_v46, %v821_v5 }
 0x126   :  { %v830_v17 = vpop.permute.xlu1 %829 }
 0x127   :  { %v832_v18 = vunpack.i.h.bf16 %v830_v17  ;;  %v831_v19 = vunpack.i.l.bf16 %v830_v17  ;;  %v195_v38 = vsel %vm178_vm12, %v826_v16, %v827_v15  ;;  %v194_v39 = vsel %vm178_vm12, %v772_v23, %v826_v16 }
 0x128   :  { %v835_v24 = vpop.permute.xlu0 %834  ;;  %v424_v15 = vsel %vm408_vm1, %v767_v62, %v816_v55  ;;  %v482_v62 = vld [vmem:[%s1156_s1] sm:$0xff]  ;;  %s884_s1 = scalar_lea.vmem %s686_s23, 512 }
 0x129   :  { %v837_v29 = vunpack.i.h.bf16 %v835_v24  ;;  %v836_v31 = vunpack.i.l.bf16 %v835_v24  ;;  %v232_v32 = vsel %vm230_vm13, %v831_v19, %v832_v18  ;;  %v231_v33 = vsel %vm230_vm13, %v776_v8, %v831_v19  ;;  %p885_p8 = scmp.ne.s32.totalorder %s686_s23, %s884_s1  ;;  %p890_p10 = scmp.lt.s32.totalorder %s884_s1, %s884_s1 }
 0x12a   :  { %v840_v34 = vpop.permute.xlu1 %839  ;;  %v704_v36 = vpack.c.bf16 %v232_v32, %v180_v25  ;;  %v706_v37 = vpack.c.bf16 %v231_v33, %v179_v26 }
 0x12b   :  { %v842_v40 = vunpack.i.h.bf16 %v840_v34  ;;  %v841_v41 = vunpack.i.l.bf16 %v840_v34  ;;  %v247_v43 = vsel %vm230_vm13, %v836_v31, %v837_v29  ;;  %v246_v44 = vsel %vm230_vm13, %v777_v7, %v836_v31  ;;  %p891_p11 = por %p890_p10, %p889_p9 }
 0x12c   :  { %v845_v48 = vpop.permute.xlu0 %844  ;;  %705 = vmatprep.subr.bf16.mxu0 %v704_v36  ;;  %v720_v49 = vpack.c.bf16 %v247_v43, %v195_v38  ;;  %v722_v50 = vpack.c.bf16 %v246_v44, %v194_v39 }
 0x12d   :  { %v847_v51 = vunpack.i.h.bf16 %v845_v48  ;;  %v846_v52 = vunpack.i.l.bf16 %v845_v48  ;;  %707 = vmatpush1.bf16.msra.mxu0 %v706_v37  ;;  %v321_v53 = vsel %vm319_vm15, %v841_v41, %v842_v40  ;;  %v320_v54 = vsel %vm319_vm15, %v781_v10, %v841_v41  ;;  %p892_p12 = pnand %p891_p11, %p885_p8 }
 0x12e   :  { %v850_v22 = vpop.permute.xlu1 %849  ;;  %721 = vmatprep.subr.bf16.mxu1 %v720_v49  ;;  %v708_v56 = vpack.c.bf16 %v321_v53, %v269_v27  ;;  %v710_v57 = vpack.c.bf16 %v320_v54, %v268_v28  ;;  %v425_v10 = vsel %vm408_vm1, %v816_v55, %v817_v42 }
 0x12f   :  { %v852_v59 = vunpack.i.h.bf16 %v850_v22  ;;  %v851_v13 = vunpack.i.l.bf16 %v850_v22  ;;  %723 = vmatpush1.bf16.msra.mxu1 %v722_v50  ;;  %v336_v14 = vsel %vm319_vm15, %v846_v52, %v847_v51  ;;  %v335_v23 = vsel %vm319_vm15, %v782_v9, %v846_v52 }
 0x130   :  { %v855_v46 = vpop.permute.xlu0 %854  ;;  %709 = vmatprep.subr.bf16.mxu0 %v708_v56  ;;  %v724_v61 = vpack.c.bf16 %v336_v14, %v284_v20  ;;  %v726_v0 = vpack.c.bf16 %v335_v23, %v283_v21 }
 0x131   :  { %v857_v2 = vunpack.i.h.bf16 %v855_v46  ;;  %v856_v3 = vunpack.i.l.bf16 %v855_v46  ;;  %711 = vmatpush1.bf16.msra.mxu0 %v710_v57  ;;  %v373_v4 = vsel %vm371_vm0, %v851_v13, %v852_v59  ;;  %v372_v5 = vsel %vm371_vm0, %v786_v12, %v851_v13 }
 0x132   :  { %v457_v6 = vpop.permute.xlu1 %456  ;;  %725 = vmatprep.subr.bf16.mxu1 %v724_v61  ;;  %v712_v7 = vpack.c.bf16 %v410_v1, %v373_v4  ;;  %v714_v8 = vpack.c.bf16 %v409_v58, %v372_v5 }
 0x133   :  { %727 = vmatpush1.bf16.msra.mxu1 %v726_v0  ;;  %v388_v9 = vsel %vm371_vm0, %v856_v3, %v857_v2  ;;  %v387_v63 = vsel %vm371_vm0, %v787_v11, %v856_v3  ;;  %v462_v18 = vsel %vm460_vm2, %v457_v6, %v1086_v60 }
 0x134   :  { %v475_v16 = vpop.permute.xlu0 %474  ;;  %713 = vmatprep.subr.bf16.mxu0 %v712_v7  ;;  %v728_v12 = vpack.c.bf16 %v425_v10, %v388_v9  ;;  %v730_v17 = vpack.c.bf16 %v424_v15, %v387_v63 }
 0x135   :  { %715 = vmatpush1.bf16.msra.mxu0 %v714_v8 }
 0x136   :  { %v473_v19 = vpop.permute.xlu1 %472  ;;  %545 = vmatprep.subr.mxu0 %v462_v18  ;;  %729 = vmatprep.subr.bf16.mxu1 %v728_v12 }
 0x137   :  { %731 = vmatpush1.bf16.msra.mxu1 %v730_v17  ;;  %v477_v35 = vsel %vm460_vm2, %v473_v19, %v475_v16 }
 0x138   :  { %v471_v20 = vpop.permute.xlu0 %470  ;;  %616 = vmatprep.subr.mxu1 %v477_v35 }
 0x139   :  { %v476_v30 = vsel %vm460_vm2, %v471_v20, %v473_v19 }
 0x13a   :  { %v455_v11 = vpop.permute.xlu1 %454 }
 0x13b   :  { %617 = vmatpush1.msra.mxu1 %v476_v30  ;;  %v461_v21 = vsel %vm460_vm2, %v455_v11, %v457_v6 }
 0x13c   :  { %546 = vmatpush1.msra.mxu0 %v461_v21  ;;  %699 = vmatmul.mubr.msk.f32.vlgmr.msra.gmra.mrb[0].mxu1 %vm525_vm3, %v482_v62 }
 0x13d   :  { %698 = vmatmul.mubr.msk.f32.vlgmr.msra.gmra.mrb[0].mxu0 %vm525_vm3, %v482_v62 }
 0x14b   :  { %v523_v60 = vpop.permute.xlu1 %522 }
 0x20f   :  { %v666_v24 = vpop.f32.mrb[0].mxu1 }
 0x210   :  { %v667_v25 = vadd.f32 %v666_v24, %v523_v60  ;;  %v595_v26 = vpop.f32.mrb[0].mxu0  ;;  %v668_v27 = vpop.f32.mrb[1].mxu1 }
 0x211   :  { %v596_v28 = vadd.f32 %v595_v26, %v523_v60  ;;  %v669_v29 = vadd.f32 %v668_v27, %v523_v60  ;;  %v597_v31 = vpop.f32.mrb[1].mxu0 }
 0x212   :  { %v673_v32 = vmax.f32 %v667_v25, 0.0  ;;  %v598_v33 = vadd.f32 %v597_v31, %v523_v60 }
 0x213   :  { %v671_v34 = vmax.f32 %v596_v28, 0.0  ;;  %v674_v36 = vmax.f32 %v669_v29, 0.0 }
 0x214   :  { %678 = vst [vmem:[#allocation7 + $0x10] sm:$0xff] %v673_v32  ;;  %v672_v37 = vmax.f32 %v598_v33, 0.0 }
 0x215   :  { %675 = vst [vmem:[#allocation7] sm:$0xff] %v671_v34  ;;  %679 = vst [vmem:[#allocation7 + $0x18] sm:$0xff] %v674_v36 }
 0x216   :  { %676 = vst [vmem:[#allocation7 + $0x8] sm:$0xff] %v672_v37 }
 0x217   :  { %895 = shalt.err (!%p892_p12)
}
 0x218   :  { %s896_s26 = scalar_lea.hbm %s1159_s4, 512 }
 0x219   :  { %p897_p13 = scmp.ne.s32.totalorder %s1159_s4, %s896_s26  ;;  %p900_p0 = scmp.lt.u32.totalorder %s896_s26, %s1159_s4 }
 0x21b   :  { %p902_p1 = pnand %p900_p0, %p897_p13 }
 0x21d   :  { %905 = shalt.err (!%p902_p1)
}
 0x21e   :  { %s930_s30 = smov 256  }
 0x21f   :  { %691 = dma.vmem_to_hbm [thread:$0]  %s686_s23, 512, %s1159_s4, [#allocation6], %s930_s30, %s930_s30, %s916_s8  }
 0x220   :  { %908 = dma.done.wait [#allocation6], 512  }
 0x221   :  { %909 = vsyncadd [#allocation6], 4294966784 }
 0x222   :  { %695 = vsyncpa [#allocation5], 1 }
 0x223   :  { %696 = vsyncpa [#allocation6], 1 }

// kernel: tpu_custom_call.1
= control target key start
LH: loop header
LB: loop body
LE: loop exit
PB: predicated region body
PF: predicated region fallthrough
CT: control target
= control target key end

     0   :  { %9 = vsyncpa [#allocation5], 0  ;;  %s1155_s0 = inlined_call_operand.hbm [shape: f32[2,4,256], index: 0, kind: input, shape index: {}]   ;;  %s1156_s1 = inlined_call_operand.vmem [shape: f32[8,72], index: 1, kind: input, shape index: {}]   ;;  %s1157_s2 = inlined_call_operand.vmem [shape: f32[8,1], index: 2, kind: input, shape index: {}]   ;;  %s1158_s3 = inlined_call_operand.vmem [shape: f32[2,256], index: 3, kind: input, shape index: {}]   ;;  %s1159_s4 = inlined_call_operand.hbm [shape: f32[2,8,256], index: 4, kind: output, shape index: {}]  }
   0x1   :  { %10 = vsyncpa [#allocation6], 0  ;;  %s910_s15 = smov [#allocation4]   ;;  %s862_s19 = scalar_lea.hbm %s1155_s0, 256 }
   0x2   :  { %s16_s16 = sshll.u32 %s910_s15, 4  ;;  %p863_p0 = scmp.ne.s32.totalorder %s1155_s0, %s862_s19  ;;  %s17_s16 = int_to_ptr.vmem [resolvable:$true] %s16_s16 }
   0x3   :  { %p866_p1 = scmp.lt.u32.totalorder %s862_s19, %s1155_s0 }
   0x5   :  { %p868_p2 = pnand %p866_p1, %p863_p0 }
   0x7   :  { %871 = shalt.err (!%p868_p2)
}
   0x8   :  { %s872_s24 = scalar_lea.vmem %s17_s16, 256  ;;  %p877_p4 = scmp.lt.s32.totalorder %s17_s16, %s17_s16 }
   0x9   :  { %p873_p3 = scmp.ne.s32.totalorder %s17_s16, %s872_s24  ;;  %p878_p5 = scmp.lt.s32.totalorder %s872_s24, %s872_s24 }
   0xb   :  { %p879_p6 = por %p878_p5, %p877_p4 }
   0xd   :  { %p880_p7 = pnand %p879_p6, %p873_p3 }
   0xf   :  { %883 = shalt.err (!%p880_p7)
}
  0x10   :  { %s911_s25 = smov 128   ;;  %s912_s26 = smov 8  }
  0x11   :  { %22 = dma.hbm_to_vmem [thread:$0]  %s1155_s0, 256, %s17_s16, [#allocation5], %s911_s25, %s911_s25, %s912_s26  }
  0x12   :  { %906 = dma.done.wait [#allocation5], 256  }
  0x13   :  { %907 = vsyncadd [#allocation5], 4294967040  ;;  %v84_v0 = vlaneseq  ;;  %vm32_vm0 = vcmask 138240   ;;  %vm38_vm1 = vcmask 1047692   ;;  %v913_v1 = vmov 0.0   ;;  %v47_v3 = vld [vmem:[#allocation4 + $0x8] sm:$0xff] }
  0x14   :  { %34 = vst.msk [vmem:[#allocation2 + $0x18] sm:$0xff] %vm32_vm0, %v913_v1  ;;  %33 = vst.msk [vmem:[#allocation2] sm:$0xff] %vm32_vm0, %v913_v1  ;;  %vm35_vm2 = vcmask 277640   ;;  %vm41_vm3 = vcmask 138244   ;;  %664 = vmatprep.mubr.f32.mxu1 %v913_v1  ;;  %593 = vmatprep.mubr.f32.mxu0 %v913_v1  ;;  %v46_v4 = vld [vmem:[#allocation4] sm:$0xff]  ;;  %s914_s0 = smov 17   ;;  %v51_v5 = vcombine.high %v47_v3, %v47_v3 }
  0x15   :  { %40 = vst [vmem:[#allocation2 + $0x8] sm:$0xf0] %v913_v1  ;;  %44 = vst [vmem:[#allocation2 + $0x20] sm:$0xf0] %v913_v1  ;;  %v85_v2 = vshrl.u32 %v84_v0, 7  ;;  %56 = vrot.lane.b32.xlu1 %v47_v3, %s914_s0  ;;  %52 = vrot.lane.b32.xlu0 %v46_v4, %s914_s0  ;;  %v50_v6 = vcombine.high %v46_v4, %v46_v4  ;;  %s915_s7 = smov 2  }
  0x16   :  { %43 = vst.msk [vmem:[#allocation2 + $0x18] sm:$0xf0] %vm38_vm1, %v913_v1  ;;  %39 = vst.msk [vmem:[#allocation2] sm:$0xf0] %vm38_vm1, %v913_v1  ;;  %s916_s8 = smov 16   ;;  %s917_s9 = smov 18  }
  0x17   :  { %37 = vst.msk [vmem:[#allocation2 + $0x28] sm:$0xff] %vm35_vm2, %v913_v1  ;;  %36 = vst.msk [vmem:[#allocation2 + $0x10] sm:$0xff] %vm35_vm2, %v913_v1  ;;  %v90_v7 = vsub.s32 1, %v85_v2  ;;  %v86_v8 = vsub.s32 0, %v85_v2  ;;  %s918_s10 = smov 32   ;;  %vm68_vm4 = vcmask 1043592  }
  0x18   :  { %45 = vst.msk [vmem:[#allocation2 + $0x28] sm:$0xf0] %vm41_vm3, %v913_v1  ;;  %42 = vst.msk [vmem:[#allocation2 + $0x10] sm:$0xf0] %vm41_vm3, %v913_v1  ;;  %vm71_vm5 = vcmask 134144   ;;  %s920_s11 = smov 111  }
  0x19   :  { %v697_v9 = vld [vmem:[%s1158_s3 + $0x1] ss:$2 sm:$0x3]  ;;  %58 = vrot.lane.b32.xlu1 %v51_v5, %s914_s0  ;;  %54 = vrot.lane.b32.xlu0 %v50_v6, %s914_s0  ;;  %v76_v12 = vld [vmem:[%s1158_s3] ss:$2 sm:$0x3] }
  0x1a   :  { %v153_v10 = vrot.slane %v697_v9, %v90_v7  ;;  %v149_v11 = vrot.slane %v697_v9, %v86_v8  ;;  %v976_v13 = vrot.slane %v76_v12, %v90_v7  ;;  %v978_v14 = vrot.slane %v76_v12, %v86_v8  ;;  %s919_s3 = smov 34   ;;  %s921_s12 = smov 127  }
  0x1b   :  { %s922_s13 = smov 126   ;;  %s923_s14 = smov 95   ;;  %vm158_vm6 = vcmask 15360   ;;  %vm210_vm7 = vcmask 130048   ;;  %vm299_vm8 = vcmask 146432   ;;  %vm351_vm9 = vcmask 261120  }
  0x1c   :  { %s924_s15 = smov 112   ;;  %s925_s16 = smov 110   ;;  %vm440_vm10 = vcmask 277504   ;;  %vm117_vm11 = vcmask 1039360   ;;  %vm178_vm12 = vcmask 1031168   ;;  %vm230_vm13 = vcmask 916480  }
  0x1d   :  { %156 = vrot.lane.b32.xlu1 %v153_v10, %s915_s7  ;;  %154 = vrot.lane.b32.xlu0 %v149_v11, %s915_s7  ;;  %s926_s17 = smov 96   ;;  %s927_s18 = smov 94   ;;  %vm267_vm14 = vcmask 908288   ;;  %vm319_vm15 = vcmask 900096   ;;  %vm408_vm1 = vcmask 777216   ;;  %vm460_vm2 = vcmask 769024  }
  0x1e   :  { %vm525_vm3 = vcmask 588800   ;;  %s929_s22 = smov [#allocation7]  }
  0x1f   :  { %s685_s23 = sshll.u32 %s929_s22, 4  ;;  %s686_s23 = int_to_ptr.vmem [resolvable:$true] %s685_s23 }
  0x20   :  { %p889_p9 = scmp.lt.s32.totalorder %s686_s23, %s686_s23 }
  0x21   :  { %208 = vrot.lane.b32.xlu1 %v976_v13, %s916_s8  ;;  %206 = vrot.lane.b32.xlu0 %v978_v14, %s916_s8 }
  0x25   :  { %297 = vrot.lane.b32.xlu1 %v153_v10, %s917_s9  ;;  %295 = vrot.lane.b32.xlu0 %v149_v11, %s917_s9 }
  0x29   :  { %349 = vrot.lane.b32.xlu1 %v976_v13, %s918_s10  ;;  %347 = vrot.lane.b32.xlu0 %v978_v14, %s918_s10 }
  0x2d   :  { %438 = vrot.lane.b32.xlu1 %v153_v10, %s919_s3  ;;  %436 = vrot.lane.b32.xlu0 %v149_v11, %s919_s3 }
  0x87   :  { %v57_v15 = vpop.permute.xlu1 %56  ;;  %v53_v16 = vpop.permute.xlu0 %52 }
  0x88   :  { %73 = vst.msk [vmem:[#allocation2 + $0x18] sm:$0xf] %vm68_vm4, %v57_v15  ;;  %69 = vst.msk [vmem:[#allocation2] sm:$0xf] %vm68_vm4, %v53_v16 }
  0x8b   :  { %v59_v17 = vpop.permute.xlu1 %58  ;;  %v55_v18 = vpop.permute.xlu0 %54 }
  0x8c   :  { %v61_v19 = vsel %vm32_vm0, %v57_v15, %v59_v17  ;;  %75 = vst.msk [vmem:[#allocation2 + $0x28] sm:$0xf] %vm71_vm5, %v59_v17  ;;  %v60_v20 = vsel %vm32_vm0, %v53_v16, %v55_v18  ;;  %72 = vst.msk [vmem:[#allocation2 + $0x10] sm:$0xf] %vm71_vm5, %v55_v18  ;;  %vm371_vm0 = vcmask 785408  }
  0x8d   :  { %74 = vst [vmem:[#allocation2 + $0x20] sm:$0xf] %v61_v19  ;;  %70 = vst [vmem:[#allocation2 + $0x8] sm:$0xf] %v60_v20 }
  0x8f   :  { %v155_v21 = vpop.permute.xlu0 %154  ;;  %v988_v22 = vld [vmem:[#allocation2] sm:$0xff]  ;;  %v990_v23 = vld [vmem:[#allocation2 + $0x18] sm:$0xff]  ;;  %v157_v27 = vpop.permute.xlu1 %156 }
  0x90   :  { %v163_v24 = vmul.f32 %v155_v21, %v988_v22  ;;  %v166_v25 = vmul.f32 %v155_v21, %v990_v23  ;;  %v758_v26 = vpack.i.bf16 %v990_v23, %v988_v22  ;;  %v159_v50 = vsel %vm158_vm6, %v155_v21, %v157_v27 }
  0x91   :  { %v928_v21 = vmov 0  }
  0x92   :  { %759 = vrot.lane.b32.xlu1 %v758_v26, %s920_s11  ;;  %754 = vrot.lane.b32.xlu0 %v758_v26, %s921_s12  ;;  %v768_v29 = vpack.i.bf16 %v166_v25, %v163_v24 }
  0x93   :  { %v207_v28 = vpop.permute.xlu0 %206  ;;  %v209_v33 = vpop.permute.xlu1 %208  ;;  %v141_v41 = vld [vmem:[#allocation2 + $0x10] sm:$0xff]  ;;  %v1010_v45 = vld [vmem:[#allocation2 + $0x28] sm:$0xff]  ;;  %858 = vset.pattern.permute.xlu1 %v928_v21  ;;  %859 = vset.pattern.permute.xlu0 %v928_v21 }
  0x94   :  { %v215_v30 = vmul.f32 %v207_v28, %v988_v22  ;;  %v218_v31 = vmul.f32 %v207_v28, %v990_v23  ;;  %v1007_v42 = vld [vmem:[#allocation2 + $0x8] sm:$0xff]  ;;  %v1012_v46 = vld [vmem:[#allocation2 + $0x20] sm:$0xff]  ;;  %v165_v52 = vmul.f32 %v157_v27, %v141_v41  ;;  %v211_v54 = vsel %vm210_vm7, %v207_v28, %v209_v33 }
  0x95   :  { %v788_v47 = vpack.i.bf16 %v141_v41, %v1007_v42  ;;  %v793_v48 = vpack.i.bf16 %v1010_v45, %v1012_v46  ;;  %v164_v53 = vmul.f32 %v159_v50, %v1007_v42  ;;  %v168_v55 = vmul.f32 %v157_v27, %v1010_v45  ;;  %v519_v28 = vld [vmem:[%s1157_s2] sm:$0xff] }
  0x96   :  { %769 = vrot.lane.b32.xlu1 %v768_v29, %s922_s13  ;;  %764 = vrot.lane.b32.xlu0 %v758_v26, %s923_s14  ;;  %v773_v36 = vpack.i.bf16 %v218_v31, %v215_v30  ;;  %v167_v56 = vmul.f32 %v159_v50, %v1012_v46  ;;  %v217_v58 = vmul.f32 %v209_v33, %v141_v41 }
  0x97   :  { %v296_v32 = vpop.permute.xlu0 %295  ;;  %v298_v43 = vpop.permute.xlu1 %297  ;;  %v216_v59 = vmul.f32 %v211_v54, %v1007_v42  ;;  %v818_v60 = vpack.i.bf16 %v165_v52, %v164_v53  ;;  %v220_v62 = vmul.f32 %v209_v33, %v1010_v45  ;;  %v219_v63 = vmul.f32 %v211_v54, %v1012_v46 }
  0x98   :  { %v304_v34 = vmul.f32 %v296_v32, %v988_v22  ;;  %v307_v35 = vmul.f32 %v296_v32, %v990_v23  ;;  %v300_v61 = vsel %vm299_vm8, %v296_v32, %v298_v43  ;;  %v823_v0 = vpack.i.bf16 %v168_v55, %v167_v56 }
  0x99   :  { %v306_v1 = vmul.f32 %v298_v43, %v141_v41  ;;  %v305_v2 = vmul.f32 %v300_v61, %v1007_v42  ;;  %v828_v3 = vpack.i.bf16 %v217_v58, %v216_v59  ;;  %v309_v5 = vmul.f32 %v298_v43, %v1010_v45 }
  0x9a   :  { %774 = vrot.lane.b32.xlu0 %v773_v36, %s924_s15  ;;  %v778_v40 = vpack.i.bf16 %v307_v35, %v304_v34  ;;  %v308_v6 = vmul.f32 %v300_v61, %v1012_v46  ;;  %v833_v7 = vpack.i.bf16 %v220_v62, %v219_v63  ;;  %v95_v43 = vmul.f32 %v1007_v42, %v976_v13 }
  0x9b   :  { %v348_v37 = vpop.permute.xlu0 %347  ;;  %v350_v49 = vpop.permute.xlu1 %349  ;;  %v838_v10 = vpack.i.bf16 %v306_v1, %v305_v2  ;;  %v97_v53 = vmul.f32 %v1012_v46, %v976_v13  ;;  %v96_v54 = vmul.f32 %v990_v23, %v978_v14 }
  0x9c   :  { %v356_v38 = vmul.f32 %v348_v37, %v988_v22  ;;  %v359_v39 = vmul.f32 %v348_v37, %v990_v23  ;;  %v352_v4 = vsel %vm351_vm9, %v348_v37, %v350_v49  ;;  %v358_v8 = vmul.f32 %v350_v49, %v141_v41 }
  0x9d   :  { %v357_v9 = vmul.f32 %v352_v4, %v1007_v42  ;;  %v361_v11 = vmul.f32 %v350_v49, %v1010_v45  ;;  %v360_v12 = vmul.f32 %v352_v4, %v1012_v46  ;;  %v843_v16 = vpack.i.bf16 %v309_v5, %v308_v6 }
  0x9e   :  { %779 = vrot.lane.b32.xlu0 %v778_v40, %s925_s16  ;;  %v783_v44 = vpack.i.bf16 %v359_v39, %v356_v38 }
  0x9f   :  { %v439_v51 = vpop.permute.xlu1 %438  ;;  %v437_v15 = vpop.permute.xlu0 %436  ;;  %v848_v17 = vpack.i.bf16 %v358_v8, %v357_v9  ;;  %v853_v19 = vpack.i.bf16 %v361_v11, %v360_v12 }
  0xa0   :  { %784 = vrot.lane.b32.xlu1 %v783_v44, %s926_s17  ;;  %v447_v57 = vmul.f32 %v439_v51, %v141_v41  ;;  %v441_v18 = vsel %vm440_vm10, %v437_v15, %v439_v51  ;;  %v450_v24 = vmul.f32 %v439_v51, %v1010_v45  ;;  %v448_v26 = vmul.f32 %v437_v15, %v990_v23 }
  0xa1   :  { %v446_v20 = vmul.f32 %v441_v18, %v1007_v42  ;;  %v449_v25 = vmul.f32 %v441_v18, %v1012_v46  ;;  %v445_v27 = vmul.f32 %v437_v15, %v988_v22  ;;  %v94_v44 = vmul.f32 %v988_v22, %v978_v14 }
  0xa2   :  { %789 = vrot.lane.b32.xlu0 %v788_v47, %s921_s12 }
  0xa4   :  { %794 = vrot.lane.b32.xlu1 %v793_v48, %s921_s12 }
  0xa6   :  { %804 = vrot.lane.b32.xlu0 %v793_v48, %s920_s11 }
  0xa8   :  { %799 = vrot.lane.b32.xlu1 %v788_v47, %s920_s11 }
  0xaa   :  { %814 = vrot.lane.b32.xlu0 %v793_v48, %s923_s14 }
  0xac   :  { %809 = vrot.lane.b32.xlu1 %v788_v47, %s923_s14 }
  0xae   :  { %458 = vrot.lane.b32.xlu0 %v447_v57, %s927_s18 }
  0xb0   :  { %819 = vrot.lane.b32.xlu1 %v818_v60, %s922_s13 }
  0xb2   :  { %824 = vrot.lane.b32.xlu0 %v823_v0, %s922_s13 }
  0xb4   :  { %829 = vrot.lane.b32.xlu1 %v828_v3, %s924_s15 }
  0xb6   :  { %834 = vrot.lane.b32.xlu0 %v833_v7, %s924_s15 }
  0xb8   :  { %839 = vrot.lane.b32.xlu1 %v838_v10, %s925_s16 }
  0xba   :  { %844 = vrot.lane.b32.xlu0 %v843_v16, %s925_s16 }
  0xbc   :  { %849 = vrot.lane.b32.xlu1 %v848_v17, %s926_s17 }
  0xbe   :  { %854 = vrot.lane.b32.xlu0 %v853_v19, %s926_s17 }
  0xc0   :  { %456 = vrot.lane.b32.xlu1 %v446_v20, %s927_s18 }
  0xc2   :  { %474 = vrot.lane.b32.xlu0 %v450_v24, %s927_s18 }
  0xc4   :  { %472 = vrot.lane.b32.xlu1 %v449_v25, %s927_s18 }
  0xc6   :  { %470 = vrot.lane.b32.xlu0 %v448_v26, %s927_s18 }
  0xc8   :  { %454 = vrot.lane.b32.xlu1 %v445_v27, %s927_s18 }
  0xcc   :  { %522 = vperm.xlu1 %858, %v519_v28  }
 0x104   :  { %v755_v29 = vpop.permute.xlu0 %754  ;;  %v1060_v31 = vpop.permute.xlu1 %759 }
 0x105   :  { %v756_v37 = vunpack.i.l.bf16 %v755_v29  ;;  %v757_v40 = vunpack.i.h.bf16 %v755_v29  ;;  %v762_v13 = vunpack.i.h.bf16 %v1060_v31  ;;  %v761_v14 = vunpack.i.l.bf16 %v1060_v31 }
 0x108   :  { %v1058_v30 = vpop.permute.xlu0 %764  ;;  %v1064_v33 = vpop.permute.xlu1 %769 }
 0x109   :  { %v772_v23 = vunpack.i.h.bf16 %v1064_v33  ;;  %v771_v46 = vunpack.i.l.bf16 %v1064_v33  ;;  %v767_v62 = vunpack.i.h.bf16 %v1058_v30  ;;  %v766_v63 = vunpack.i.l.bf16 %v1058_v30 }
 0x10c   :  { %v1062_v32 = vpop.permute.xlu0 %774 }
 0x10d   :  { %v777_v7 = vunpack.i.h.bf16 %v1062_v32  ;;  %v776_v8 = vunpack.i.l.bf16 %v1062_v32 }
 0x110   :  { %v1066_v34 = vpop.permute.xlu0 %779 }
 0x111   :  { %v782_v9 = vunpack.i.h.bf16 %v1066_v34  ;;  %v781_v10 = vunpack.i.l.bf16 %v1066_v34 }
 0x112   :  { %v1068_v35 = vpop.permute.xlu1 %784 }
 0x113   :  { %v787_v11 = vunpack.i.h.bf16 %v1068_v35  ;;  %v786_v12 = vunpack.i.l.bf16 %v1068_v35 }
 0x114   :  { %v790_v36 = vpop.permute.xlu0 %789 }
 0x115   :  { %v792_v38 = vunpack.i.h.bf16 %v790_v36  ;;  %v791_v39 = vunpack.i.l.bf16 %v790_v36 }
 0x116   :  { %v795_v41 = vpop.permute.xlu1 %794 }
 0x117   :  { %v797_v45 = vunpack.i.h.bf16 %v795_v41  ;;  %v796_v47 = vunpack.i.l.bf16 %v795_v41  ;;  %v119_v48 = vsel %vm117_vm11, %v791_v39, %v792_v38  ;;  %v118_v49 = vsel %vm117_vm11, %v756_v37, %v791_v39 }
 0x118   :  { %v805_v50 = vpop.permute.xlu0 %804  ;;  %v700_v51 = vpack.c.bf16 %v119_v48, %v95_v43  ;;  %v702_v52 = vpack.c.bf16 %v118_v49, %v94_v44 }
 0x119   :  { %v134_v42 = vsel %vm117_vm11, %v796_v47, %v797_v45  ;;  %v133_v55 = vsel %vm117_vm11, %v757_v40, %v796_v47  ;;  %v807_v0 = vunpack.i.h.bf16 %v805_v50  ;;  %v806_v1 = vunpack.i.l.bf16 %v805_v50 }
 0x11a   :  { %v800_v22 = vpop.permute.xlu1 %799  ;;  %701 = vmatprep.subr.bf16.mxu0 %v700_v51  ;;  %v716_v56 = vpack.c.bf16 %v134_v42, %v97_v53  ;;  %v718_v57 = vpack.c.bf16 %v133_v55, %v96_v54 }
 0x11b   :  { %703 = vmatpush1.bf16.msra.mxu0 %v702_v52  ;;  %v802_v2 = vunpack.i.h.bf16 %v800_v22  ;;  %v801_v3 = vunpack.i.l.bf16 %v800_v22  ;;  %v284_v20 = vsel %vm267_vm14, %v806_v1, %v807_v0  ;;  %v283_v21 = vsel %vm267_vm14, %v762_v13, %v806_v1 }
 0x11c   :  { %717 = vmatprep.subr.bf16.mxu1 %v716_v56  ;;  %v1082_v58 = vpop.permute.xlu0 %814 }
 0x11d   :  { %719 = vmatpush1.bf16.msra.mxu1 %v718_v57  ;;  %v269_v27 = vsel %vm267_vm14, %v801_v3, %v802_v2  ;;  %v268_v28 = vsel %vm267_vm14, %v761_v14, %v801_v3  ;;  %v817_v42 = vunpack.i.h.bf16 %v1082_v58  ;;  %v816_v55 = vunpack.i.l.bf16 %v1082_v58 }
 0x11e   :  { %v1084_v59 = vpop.permute.xlu1 %809 }
 0x11f   :  { %v812_v45 = vunpack.i.h.bf16 %v1084_v59  ;;  %v811_v47 = vunpack.i.l.bf16 %v1084_v59 }
 0x120   :  { %v1086_v60 = vpop.permute.xlu0 %458 }
 0x121   :  { %v410_v1 = vsel %vm408_vm1, %v811_v47, %v812_v45  ;;  %v409_v58 = vsel %vm408_vm1, %v766_v63, %v811_v47 }
 0x122   :  { %v820_v61 = vpop.permute.xlu1 %819 }
 0x123   :  { %v822_v4 = vunpack.i.h.bf16 %v820_v61  ;;  %v821_v5 = vunpack.i.l.bf16 %v820_v61 }
 0x124   :  { %v825_v6 = vpop.permute.xlu0 %824 }
 0x125   :  { %v827_v15 = vunpack.i.h.bf16 %v825_v6  ;;  %v826_v16 = vunpack.i.l.bf16 %v825_v6  ;;  %v180_v25 = vsel %vm178_vm12, %v821_v5, %v822_v4  ;;  %v179_v26 = vsel %vm178_vm12, %v771_v46, %v821_v5 }
 0x126   :  { %v830_v17 = vpop.permute.xlu1 %829 }
 0x127   :  { %v832_v18 = vunpack.i.h.bf16 %v830_v17  ;;  %v831_v19 = vunpack.i.l.bf16 %v830_v17  ;;  %v195_v38 = vsel %vm178_vm12, %v826_v16, %v827_v15  ;;  %v194_v39 = vsel %vm178_vm12, %v772_v23, %v826_v16 }
 0x128   :  { %v835_v24 = vpop.permute.xlu0 %834  ;;  %v424_v15 = vsel %vm408_vm1, %v767_v62, %v816_v55  ;;  %v482_v62 = vld [vmem:[%s1156_s1] sm:$0xff]  ;;  %s884_s1 = scalar_lea.vmem %s686_s23, 512 }
 0x129   :  { %v837_v29 = vunpack.i.h.bf16 %v835_v24  ;;  %v836_v31 = vunpack.i.l.bf16 %v835_v24  ;;  %v232_v32 = vsel %vm230_vm13, %v831_v19, %v832_v18  ;;  %v231_v33 = vsel %vm230_vm13, %v776_v8, %v831_v19  ;;  %p885_p8 = scmp.ne.s32.totalorder %s686_s23, %s884_s1  ;;  %p890_p10 = scmp.lt.s32.totalorder %s884_s1, %s884_s1 }
 0x12a   :  { %v840_v34 = vpop.permute.xlu1 %839  ;;  %v704_v36 = vpack.c.bf16 %v232_v32, %v180_v25  ;;  %v706_v37 = vpack.c.bf16 %v231_v33, %v179_v26 }
 0x12b   :  { %v842_v40 = vunpack.i.h.bf16 %v840_v34  ;;  %v841_v41 = vunpack.i.l.bf16 %v840_v34  ;;  %v247_v43 = vsel %vm230_vm13, %v836_v31, %v837_v29  ;;  %v246_v44 = vsel %vm230_vm13, %v777_v7, %v836_v31  ;;  %p891_p11 = por %p890_p10, %p889_p9 }
 0x12c   :  { %v845_v48 = vpop.permute.xlu0 %844  ;;  %705 = vmatprep.subr.bf16.mxu0 %v704_v36  ;;  %v720_v49 = vpack.c.bf16 %v247_v43, %v195_v38  ;;  %v722_v50 = vpack.c.bf16 %v246_v44, %v194_v39 }
 0x12d   :  { %v847_v51 = vunpack.i.h.bf16 %v845_v48  ;;  %v846_v52 = vunpack.i.l.bf16 %v845_v48  ;;  %707 = vmatpush1.bf16.msra.mxu0 %v706_v37  ;;  %v321_v53 = vsel %vm319_vm15, %v841_v41, %v842_v40  ;;  %v320_v54 = vsel %vm319_vm15, %v781_v10, %v841_v41  ;;  %p892_p12 = pnand %p891_p11, %p885_p8 }
 0x12e   :  { %v850_v22 = vpop.permute.xlu1 %849  ;;  %721 = vmatprep.subr.bf16.mxu1 %v720_v49  ;;  %v708_v56 = vpack.c.bf16 %v321_v53, %v269_v27  ;;  %v710_v57 = vpack.c.bf16 %v320_v54, %v268_v28  ;;  %v425_v10 = vsel %vm408_vm1, %v816_v55, %v817_v42 }
 0x12f   :  { %v852_v59 = vunpack.i.h.bf16 %v850_v22  ;;  %v851_v13 = vunpack.i.l.bf16 %v850_v22  ;;  %723 = vmatpush1.bf16.msra.mxu1 %v722_v50  ;;  %v336_v14 = vsel %vm319_vm15, %v846_v52, %v847_v51  ;;  %v335_v23 = vsel %vm319_vm15, %v782_v9, %v846_v52 }
 0x130   :  { %v855_v46 = vpop.permute.xlu0 %854  ;;  %709 = vmatprep.subr.bf16.mxu0 %v708_v56  ;;  %v724_v61 = vpack.c.bf16 %v336_v14, %v284_v20  ;;  %v726_v0 = vpack.c.bf16 %v335_v23, %v283_v21 }
 0x131   :  { %v857_v2 = vunpack.i.h.bf16 %v855_v46  ;;  %v856_v3 = vunpack.i.l.bf16 %v855_v46  ;;  %711 = vmatpush1.bf16.msra.mxu0 %v710_v57  ;;  %v373_v4 = vsel %vm371_vm0, %v851_v13, %v852_v59  ;;  %v372_v5 = vsel %vm371_vm0, %v786_v12, %v851_v13 }
 0x132   :  { %v457_v6 = vpop.permute.xlu1 %456  ;;  %725 = vmatprep.subr.bf16.mxu1 %v724_v61  ;;  %v712_v7 = vpack.c.bf16 %v410_v1, %v373_v4  ;;  %v714_v8 = vpack.c.bf16 %v409_v58, %v372_v5 }
 0x133   :  { %727 = vmatpush1.bf16.msra.mxu1 %v726_v0  ;;  %v388_v9 = vsel %vm371_vm0, %v856_v3, %v857_v2  ;;  %v387_v63 = vsel %vm371_vm0, %v787_v11, %v856_v3  ;;  %v462_v18 = vsel %vm460_vm2, %v457_v6, %v1086_v60 }
 0x134   :  { %v475_v16 = vpop.permute.xlu0 %474  ;;  %713 = vmatprep.subr.bf16.mxu0 %v712_v7  ;;  %v728_v12 = vpack.c.bf16 %v425_v10, %v388_v9  ;;  %v730_v17 = vpack.c.bf16 %v424_v15, %v387_v63 }
 0x135   :  { %715 = vmatpush1.bf16.msra.mxu0 %v714_v8 }
 0x136   :  { %v473_v19 = vpop.permute.xlu1 %472  ;;  %545 = vmatprep.subr.mxu0 %v462_v18  ;;  %729 = vmatprep.subr.bf16.mxu1 %v728_v12 }
 0x137   :  { %731 = vmatpush1.bf16.msra.mxu1 %v730_v17  ;;  %v477_v35 = vsel %vm460_vm2, %v473_v19, %v475_v16 }
 0x138   :  { %v471_v20 = vpop.permute.xlu0 %470  ;;  %616 = vmatprep.subr.mxu1 %v477_v35 }
 0x139   :  { %v476_v30 = vsel %vm460_vm2, %v471_v20, %v473_v19 }
 0x13a   :  { %v455_v11 = vpop.permute.xlu1 %454 }
 0x13b   :  { %617 = vmatpush1.msra.mxu1 %v476_v30  ;;  %v461_v21 = vsel %vm460_vm2, %v455_v11, %v457_v6 }
 0x13c   :  { %546 = vmatpush1.msra.mxu0 %v461_v21  ;;  %699 = vmatmul.mubr.msk.f32.vlgmr.msra.gmra.mrb[0].mxu1 %vm525_vm3, %v482_v62 }
 0x13d   :  { %698 = vmatmul.mubr.msk.f32.vlgmr.msra.gmra.mrb[0].mxu0 %vm525_vm3, %v482_v62 }
 0x14b   :  { %v523_v60 = vpop.permute.xlu1 %522 }
 0x20f   :  { %v666_v24 = vpop.f32.mrb[0].mxu1 }
 0x210   :  { %v667_v25 = vadd.f32 %v666_v24, %v523_v60  ;;  %v595_v26 = vpop.f32.mrb[0].mxu0  ;;  %v668_v27 = vpop.f32.mrb[1].mxu1 }
 0x211   :  { %v596_v28 = vadd.f32 %v595_v26, %v523_v60  ;;  %v669_v29 = vadd.f32 %v668_v27, %v523_v60  ;;  %v597_v31 = vpop.f32.mrb[1].mxu0 }
 0x212   :  { %v673_v32 = vmax.f32 %v667_v25, 0.0  ;;  %v598_v33 = vadd.f32 %v597_v31, %v523_v60 }
 0x213   :  { %v671_v34 = vmax.f32 %v596_v28, 0.0  ;;  %v674_v36 = vmax.f32 %v669_v29, 0.0 }
 0x214   :  { %678 = vst [vmem:[#allocation7 + $0x10] sm:$0xff] %v673_v32  ;;  %v672_v37 = vmax.f32 %v598_v33, 0.0 }
 0x215   :  { %675 = vst [vmem:[#allocation7] sm:$0xff] %v671_v34  ;;  %679 = vst [vmem:[#allocation7 + $0x18] sm:$0xff] %v674_v36 }
 0x216   :  { %676 = vst [vmem:[#allocation7 + $0x8] sm:$0xff] %v672_v37 }
 0x217   :  { %895 = shalt.err (!%p892_p12)
}
 0x218   :  { %s896_s26 = scalar_lea.hbm %s1159_s4, 512 }
 0x219   :  { %p897_p13 = scmp.ne.s32.totalorder %s1159_s4, %s896_s26  ;;  %p900_p0 = scmp.lt.u32.totalorder %s896_s26, %s1159_s4 }
 0x21b   :  { %p902_p1 = pnand %p900_p0, %p897_p13 }
 0x21d   :  { %905 = shalt.err (!%p902_p1)
}
 0x21e   :  { %s930_s30 = smov 256  }
 0x21f   :  { %691 = dma.vmem_to_hbm [thread:$0]  %s686_s23, 512, %s1159_s4, [#allocation6], %s930_s30, %s930_s30, %s916_s8  }
 0x220   :  { %908 = dma.done.wait [#allocation6], 512  }
 0x221   :  { %909 = vsyncadd [#allocation6], 4294966784 }
 0x222   :  { %695 = vsyncpa [#allocation5], 1 }
 0x223   :  { %696 = vsyncpa [#allocation6], 1 }

</bundles_post_ra>
